<compile_context>
chip_gen: v7x
topology: tpu7x:2x2x1
jax: 0.10.0
libtpu: 0.0.40
codegen_flags: <defaults>
</compile_context>

<pallas_src>
import jax
import jax.numpy as jnp
from jax.experimental import pallas as pl
from jax.experimental.pallas import tpu as pltpu

# ----------------------------- synthetic ViT config --------------------------
IMG = 16          # image height / width
PATCH = 8         # patch size  -> 2x2 = 4 patches
CH = 3            # input channels (RGB, as ViTForImageClassification expects)
HIDDEN = 32       # hidden size
HEADS = 2
HEAD_DIM = HIDDEN // HEADS
INTER = 64        # MLP intermediate size
LAYERS = 2
NUM_CLASSES = 10
LN_EPS = 1e-12    # HF ViT layer_norm_eps default


# ------------------------------- fused Pallas kernel -------------------------
def _vit_kernel(tokens_ref, base_ref, patch_w_ref,
                ln1_g_ref, ln1_b_ref, qkv_w_ref, qkv_b_ref,
                wo_ref, bo_ref, ln2_g_ref, ln2_b_ref,
                w1_ref, b1_ref, w2_ref, b2_ref,
                lnf_g_ref, lnf_b_ref, head_w_ref, head_b_ref,
                probs_ref):
    """One batch element per grid step; all activations stay in vregs/VMEM."""
    f32 = jnp.float32
    scale = 1.0 / (HEAD_DIM ** 0.5)

    def layer_norm(x, g, b):
        mu = jnp.mean(x, axis=-1, keepdims=True)
        var = jnp.mean(jnp.square(x - mu), axis=-1, keepdims=True)
        return (x - mu) * jax.lax.rsqrt(var + LN_EPS) * g + b

    def gelu_exact(x):
        # HF / PyTorch ViT uses exact erf-GELU.
        return 0.5 * x * (1.0 + jax.lax.erf(x * 0.7071067811865476))

    # Patch embedding fused with [CLS]/position embedding:
    #   `tokens` row 0 is all-zero (CLS placeholder), rows 1.. are flattened patches;
    #   `base` carries cls+pos[0] on row 0 and pos[i]+patch_bias on patch rows.
    h = jnp.dot(tokens_ref[...], patch_w_ref[...],
                preferred_element_type=f32) + base_ref[...]            # (S, HIDDEN)

    for l in range(LAYERS):               # static unroll; layer weights indexed statically
        # ---- self-attention block (pre-LN), fused QKV projection ----
        xn = layer_norm(h, ln1_g_ref[l], ln1_b_ref[l])
        qkv = jnp.dot(xn, qkv_w_ref[l], preferred_element_type=f32) + qkv_b_ref[l]
        q = qkv[:, 0 * HIDDEN:1 * HIDDEN]
        k = qkv[:, 1 * HIDDEN:2 * HIDDEN]
        v = qkv[:, 2 * HIDDEN:3 * HIDDEN]
        wo_l = wo_ref[l]                                               # (HIDDEN, HIDDEN)
        attn = bo_ref[l]                                               # (1, HIDDEN), broadcasts
        for hh in range(HEADS):
            c0 = hh * HEAD_DIM
            q_h = q[:, c0:c0 + HEAD_DIM]
            k_h = k[:, c0:c0 + HEAD_DIM]
            v_h = v[:, c0:c0 + HEAD_DIM]
            s = jnp.dot(q_h, k_h.T, preferred_element_type=f32) * scale   # (S, S)
            s = s - jnp.max(s, axis=-1, keepdims=True)
            p = jnp.exp(s)
            p = p * pl.reciprocal(jnp.sum(p, axis=-1, keepdims=True), approx=True)
            ctx_h = jnp.dot(p, v_h, preferred_element_type=f32)           # (S, HEAD_DIM)
            # concat-free output projection: concat_h(ctx_h) @ Wo == sum_h ctx_h @ Wo[rows_h]
            attn = attn + jnp.dot(ctx_h, wo_l[c0:c0 + HEAD_DIM, :],
                                  preferred_element_type=f32)
        h = h + attn                                                   # residual

        # ---- MLP block (pre-LN, exact erf-GELU) ----
        xn = layer_norm(h, ln2_g_ref[l], ln2_b_ref[l])
        m = gelu_exact(jnp.dot(xn, w1_ref[l], preferred_element_type=f32) + b1_ref[l])
        h = h + jnp.dot(m, w2_ref[l], preferred_element_type=f32) + b2_ref[l]

    # ---- final LN, classifier on [CLS] token, softmax over classes ----
    hn = layer_norm(h, lnf_g_ref[...], lnf_b_ref[...])
    cls_tok = hn[0:1, :]                                               # (1, HIDDEN)
    logits = jnp.dot(cls_tok, head_w_ref[...],
                     preferred_element_type=f32) + head_b_ref[...]     # (1, NUM_CLASSES)
    logits = logits - jnp.max(logits, axis=-1, keepdims=True)
    e = jnp.exp(logits)
    probs_ref[...] = e / jnp.sum(e, axis=-1, keepdims=True)            # exact normalization


# ----------------------------- parameter creation ----------------------------
def init_params(key):
    def nxt():
        nonlocal key
        key, sub = jax.random.split(key)
        return sub

    def nrm(shape, scale=0.02):
        return scale * jax.random.normal(nxt(), shape, jnp.float32)

    n_patches = (IMG // PATCH) ** 2
    S = n_patches + 1
    L = LAYERS
    return {
        "patch_w": nrm((CH * PATCH * PATCH, HIDDEN)),   # Conv2d(k=stride=PATCH) as matmul
        "patch_b": jnp.zeros((HIDDEN,), jnp.float32),
        "cls": nrm((1, HIDDEN)),
        "pos": nrm((S, HIDDEN)),
        # per-layer weights stacked on a leading layer axis; q/k/v fused on the output dim
        "ln1_g": jnp.ones((L, 1, HIDDEN), jnp.float32),
        "ln1_b": jnp.zeros((L, 1, HIDDEN), jnp.float32),
        "qkv_w": nrm((L, HIDDEN, 3 * HIDDEN)),
        "qkv_b": jnp.zeros((L, 1, 3 * HIDDEN), jnp.float32),
        "wo": nrm((L, HIDDEN, HIDDEN)),
        "bo": jnp.zeros((L, 1, HIDDEN), jnp.float32),
        "ln2_g": jnp.ones((L, 1, HIDDEN), jnp.float32),
        "ln2_b": jnp.zeros((L, 1, HIDDEN), jnp.float32),
        "w1": nrm((L, HIDDEN, INTER)),
        "b1": jnp.zeros((L, 1, INTER), jnp.float32),
        "w2": nrm((L, INTER, HIDDEN)),
        "b2": jnp.zeros((L, 1, HIDDEN), jnp.float32),
        "lnf_g": jnp.ones((1, HIDDEN), jnp.float32),
        "lnf_b": jnp.zeros((1, HIDDEN), jnp.float32),
        "head_w": nrm((HIDDEN, NUM_CLASSES)),
        "head_b": jnp.zeros((1, NUM_CLASSES), jnp.float32),
    }


# --------------------------------- forward -----------------------------------
def _full_spec(shape):
    zeros = (0,) * len(shape)
    return pl.BlockSpec(shape, lambda b, _z=zeros: _z)   # resident: same block every step


def vit_forward(params, x):
    """x: (B, C, H, W) float32 NCHW (PyTorch convention). Returns softmax probs."""
    B = x.shape[0]
    nP = IMG // PATCH
    nP2 = nP * nP
    S = nP2 + 1
    PD = CH * PATCH * PATCH

    # Layout-only glue (outside the kernel): patchify NCHW and prepend a zero CLS row
    # per batch so the in-kernel patch matmul directly produces the full token slab.
    patches = x.reshape(B, CH, nP, PATCH, nP, PATCH)
    patches = patches.transpose(0, 2, 4, 1, 3, 5).reshape(B, nP2, PD)
    tokens = jnp.concatenate([jnp.zeros((B, 1, PD), jnp.float32), patches], axis=1)

    # Param-only glue: bake cls token / position embedding / patch bias into ONE shared
    # (S, HIDDEN) slab — resident in VMEM, no per-batch duplication or per-step DMA.
    base_cls = params["cls"] + params["pos"][0:1, :]                      # (1, HIDDEN)
    base_patch = params["pos"][1:, :] + params["patch_b"].reshape(1, HIDDEN)
    base = jnp.concatenate([base_cls, base_patch], axis=0)                # (S, HIDDEN)

    inputs = (
        tokens, base, params["patch_w"],
        params["ln1_g"], params["ln1_b"], params["qkv_w"], params["qkv_b"],
        params["wo"], params["bo"], params["ln2_g"], params["ln2_b"],
        params["w1"], params["b1"], params["w2"], params["b2"],
        params["lnf_g"], params["lnf_b"], params["head_w"], params["head_b"],
    )
    in_specs = [
        pl.BlockSpec((None, S, PD), lambda b: (b, 0, 0)),   # one batch of tokens / step
    ] + [_full_spec(a.shape) for a in inputs[1:]]           # base + all weights resident

    probs = pl.pallas_call(
        _vit_kernel,
        out_shape=jax.ShapeDtypeStruct((B, 1, NUM_CLASSES), jnp.float32),
        grid=(B,),
        in_specs=in_specs,
        out_specs=pl.BlockSpec((None, 1, NUM_CLASSES), lambda b: (b, 0, 0)),
        compiler_params=pltpu.CompilerParams(
            dimension_semantics=("parallel",)),             # v7x: split batch over 2 TCs
    )(*inputs)
    return probs.reshape(B, NUM_CLASSES)


# ----------------------------------- main -------------------------------------
if __name__ == "__main__":
    key = jax.random.PRNGKey(0)
    pkey, xkey = jax.random.split(key)
    params = init_params(pkey)
    x = jax.random.normal(xkey, (2, CH, IMG, IMG), jnp.float32)   # NCHW input

    probs = jax.jit(vit_forward)(params, x)
    probs = jax.block_until_ready(probs)

    assert probs.shape == (2, NUM_CLASSES)
    assert bool(jnp.all(jnp.isfinite(probs)))
    assert bool(jnp.allclose(jnp.sum(probs, axis=-1), 1.0, atol=1e-5))
    print("KERNEL_OK")
</pallas_src>

<mosaic_0001>
module attributes {stable_mosaic.version = 11 : i64} {
  func.func @_vit_kernel(%arg0: i32, %arg1: memref<1x5x192xf32, #tpu.memory_space<vmem>>, %arg2: memref<5x32xf32, #tpu.memory_space<vmem>>, %arg3: memref<192x32xf32, #tpu.memory_space<vmem>>, %arg4: memref<2x1x32xf32, #tpu.memory_space<vmem>>, %arg5: memref<2x1x32xf32, #tpu.memory_space<vmem>>, %arg6: memref<2x32x96xf32, #tpu.memory_space<vmem>>, %arg7: memref<2x1x96xf32, #tpu.memory_space<vmem>>, %arg8: memref<2x32x32xf32, #tpu.memory_space<vmem>>, %arg9: memref<2x1x32xf32, #tpu.memory_space<vmem>>, %arg10: memref<2x1x32xf32, #tpu.memory_space<vmem>>, %arg11: memref<2x1x32xf32, #tpu.memory_space<vmem>>, %arg12: memref<2x32x64xf32, #tpu.memory_space<vmem>>, %arg13: memref<2x1x64xf32, #tpu.memory_space<vmem>>, %arg14: memref<2x64x32xf32, #tpu.memory_space<vmem>>, %arg15: memref<2x1x32xf32, #tpu.memory_space<vmem>>, %arg16: memref<1x32xf32, #tpu.memory_space<vmem>>, %arg17: memref<1x32xf32, #tpu.memory_space<vmem>>, %arg18: memref<32x10xf32, #tpu.memory_space<vmem>>, %arg19: memref<1x10xf32, #tpu.memory_space<vmem>>, %arg20: memref<1x1x10xf32, #tpu.memory_space<vmem>>) attributes {dimension_semantics = [#tpu.dimension_semantics<parallel>], iteration_bounds = array<i64: 2>, scalar_prefetch = 0 : i64, scratch_operands = 0 : i64, tpu.core_type = #tpu.core_type<tc>, window_params = [{transform_indices = @transform_0, window_bounds = array<i64: 1, 5, 192>}, {pipeline_mode = #tpu.pipeline_mode<synchronous>, transform_indices = @transform_1, window_bounds = array<i64: 5, 32>}, {pipeline_mode = #tpu.pipeline_mode<synchronous>, transform_indices = @transform_2, window_bounds = array<i64: 192, 32>}, {pipeline_mode = #tpu.pipeline_mode<synchronous>, transform_indices = @transform_3, window_bounds = array<i64: 2, 1, 32>}, {pipeline_mode = #tpu.pipeline_mode<synchronous>, transform_indices = @transform_4, window_bounds = array<i64: 2, 1, 32>}, {pipeline_mode = #tpu.pipeline_mode<synchronous>, transform_indices = @transform_5, window_bounds = array<i64: 2, 32, 96>}, {pipeline_mode = #tpu.pipeline_mode<synchronous>, transform_indices = @transform_6, window_bounds = array<i64: 2, 1, 96>}, {pipeline_mode = #tpu.pipeline_mode<synchronous>, transform_indices = @transform_7, window_bounds = array<i64: 2, 32, 32>}, {pipeline_mode = #tpu.pipeline_mode<synchronous>, transform_indices = @transform_8, window_bounds = array<i64: 2, 1, 32>}, {pipeline_mode = #tpu.pipeline_mode<synchronous>, transform_indices = @transform_9, window_bounds = array<i64: 2, 1, 32>}, {pipeline_mode = #tpu.pipeline_mode<synchronous>, transform_indices = @transform_10, window_bounds = array<i64: 2, 1, 32>}, {pipeline_mode = #tpu.pipeline_mode<synchronous>, transform_indices = @transform_11, window_bounds = array<i64: 2, 32, 64>}, {pipeline_mode = #tpu.pipeline_mode<synchronous>, transform_indices = @transform_12, window_bounds = array<i64: 2, 1, 64>}, {pipeline_mode = #tpu.pipeline_mode<synchronous>, transform_indices = @transform_13, window_bounds = array<i64: 2, 64, 32>}, {pipeline_mode = #tpu.pipeline_mode<synchronous>, transform_indices = @transform_14, window_bounds = array<i64: 2, 1, 32>}, {pipeline_mode = #tpu.pipeline_mode<synchronous>, transform_indices = @transform_15, window_bounds = array<i64: 1, 32>}, {pipeline_mode = #tpu.pipeline_mode<synchronous>, transform_indices = @transform_16, window_bounds = array<i64: 1, 32>}, {pipeline_mode = #tpu.pipeline_mode<synchronous>, transform_indices = @transform_17, window_bounds = array<i64: 32, 10>}, {pipeline_mode = #tpu.pipeline_mode<synchronous>, transform_indices = @transform_18, window_bounds = array<i64: 1, 10>}, {transform_indices = @transform_19, window_bounds = array<i64: 1, 1, 10>}]} {
    %c0 = arith.constant 0 : index
    %c0_0 = arith.constant 0 : index
    %c0_1 = arith.constant 0 : index
    %0 = vector.load %arg1[%c0, %c0_0, %c0_1] : memref<1x5x192xf32, #tpu.memory_space<vmem>>, vector<1x5x192xf32>
    %1 = vector.shape_cast %0 : vector<1x5x192xf32> to vector<5x192xf32>
    %c0_2 = arith.constant 0 : index
    %c0_3 = arith.constant 0 : index
    %2 = vector.load %arg3[%c0_2, %c0_3] : memref<192x32xf32, #tpu.memory_space<vmem>>, vector<192x32xf32>
    %cst = arith.constant dense<0.000000e+00> : vector<5x32xf32>
    %3 = tpu.matmul %1, %2, %cst {dimension_numbers = #tpu.dot_dimension_numbers<[1], [0], [0], [1], [0, 0, 1, 1], [], []>} : vector<5x192xf32>, vector<192x32xf32>, vector<5x32xf32> -> vector<5x32xf32>
    %c0_4 = arith.constant 0 : index
    %c0_5 = arith.constant 0 : index
    %4 = vector.load %arg2[%c0_4, %c0_5] : memref<5x32xf32, #tpu.memory_space<vmem>>, vector<5x32xf32>
    %5 = arith.addf %3, %4 : vector<5x32xf32>
    %c0_6 = arith.constant 0 : index
    %c0_7 = arith.constant 0 : index
    %c0_8 = arith.constant 0 : index
    %6 = vector.load %arg4[%c0_6, %c0_7, %c0_8] : memref<2x1x32xf32, #tpu.memory_space<vmem>>, vector<1x1x32xf32>
    %7 = vector.shape_cast %6 : vector<1x1x32xf32> to vector<1x32xf32>
    %c0_9 = arith.constant 0 : index
    %c0_10 = arith.constant 0 : index
    %c0_11 = arith.constant 0 : index
    %8 = vector.load %arg5[%c0_9, %c0_10, %c0_11] : memref<2x1x32xf32, #tpu.memory_space<vmem>>, vector<1x1x32xf32>
    %9 = vector.shape_cast %8 : vector<1x1x32xf32> to vector<1x32xf32>
    %cst_12 = arith.constant dense<0.000000e+00> : vector<5xf32>
    %10 = vector.multi_reduction <add>, %5, %cst_12 [1] : vector<5x32xf32> to vector<5xf32>
    %11 = vector.shape_cast %10 : vector<5xf32> to vector<5x1xf32>
    %cst_13 = arith.constant 3.200000e+01 : f32
    %12 = vector.broadcast %cst_13 : f32 to vector<5x1xf32>
    %13 = arith.divf %11, %12 : vector<5x1xf32>
    %14 = vector.broadcast %13 : vector<5x1xf32> to vector<5x32xf32>
    %15 = arith.subf %5, %14 : vector<5x32xf32>
    %16 = arith.mulf %15, %15 : vector<5x32xf32>
    %cst_14 = arith.constant dense<0.000000e+00> : vector<5xf32>
    %17 = vector.multi_reduction <add>, %16, %cst_14 [1] : vector<5x32xf32> to vector<5xf32>
    %18 = vector.shape_cast %17 : vector<5xf32> to vector<5x1xf32>
    %cst_15 = arith.constant 3.200000e+01 : f32
    %19 = vector.broadcast %cst_15 : f32 to vector<5x1xf32>
    %20 = arith.divf %18, %19 : vector<5x1xf32>
    %21 = vector.broadcast %13 : vector<5x1xf32> to vector<5x32xf32>
    %22 = arith.subf %5, %21 : vector<5x32xf32>
    %cst_16 = arith.constant 9.99999996E-13 : f32
    %23 = vector.broadcast %cst_16 : f32 to vector<5x1xf32>
    %24 = arith.addf %20, %23 : vector<5x1xf32>
    %25 = math.rsqrt %24 : vector<5x1xf32>
    %26 = vector.broadcast %25 : vector<5x1xf32> to vector<5x32xf32>
    %27 = arith.mulf %22, %26 : vector<5x32xf32>
    %28 = vector.broadcast %7 : vector<1x32xf32> to vector<5x32xf32>
    %29 = arith.mulf %27, %28 : vector<5x32xf32>
    %30 = vector.broadcast %9 : vector<1x32xf32> to vector<5x32xf32>
    %31 = arith.addf %29, %30 : vector<5x32xf32>
    %c0_17 = arith.constant 0 : index
    %c0_18 = arith.constant 0 : index
    %c0_19 = arith.constant 0 : index
    %32 = vector.load %arg6[%c0_17, %c0_18, %c0_19] : memref<2x32x96xf32, #tpu.memory_space<vmem>>, vector<1x32x96xf32>
    %33 = vector.shape_cast %32 : vector<1x32x96xf32> to vector<32x96xf32>
    %cst_20 = arith.constant dense<0.000000e+00> : vector<5x96xf32>
    %34 = tpu.matmul %31, %33, %cst_20 {dimension_numbers = #tpu.dot_dimension_numbers<[1], [0], [0], [1], [0, 0, 1, 1], [], []>} : vector<5x32xf32>, vector<32x96xf32>, vector<5x96xf32> -> vector<5x96xf32>
    %c0_21 = arith.constant 0 : index
    %c0_22 = arith.constant 0 : index
    %c0_23 = arith.constant 0 : index
    %35 = vector.load %arg7[%c0_21, %c0_22, %c0_23] : memref<2x1x96xf32, #tpu.memory_space<vmem>>, vector<1x1x96xf32>
    %36 = vector.shape_cast %35 : vector<1x1x96xf32> to vector<1x96xf32>
    %37 = vector.broadcast %36 : vector<1x96xf32> to vector<5x96xf32>
    %38 = arith.addf %34, %37 : vector<5x96xf32>
    %39 = vector.extract_strided_slice %38 {offsets = [0, 0], sizes = [5, 32], strides = [1, 1]} : vector<5x96xf32> to vector<5x32xf32>
    %40 = vector.extract_strided_slice %38 {offsets = [0, 32], sizes = [5, 32], strides = [1, 1]} : vector<5x96xf32> to vector<5x32xf32>
    %41 = vector.extract_strided_slice %38 {offsets = [0, 64], sizes = [5, 32], strides = [1, 1]} : vector<5x96xf32> to vector<5x32xf32>
    %c0_24 = arith.constant 0 : index
    %c0_25 = arith.constant 0 : index
    %c0_26 = arith.constant 0 : index
    %42 = vector.load %arg8[%c0_24, %c0_25, %c0_26] : memref<2x32x32xf32, #tpu.memory_space<vmem>>, vector<1x32x32xf32>
    %43 = vector.shape_cast %42 : vector<1x32x32xf32> to vector<32x32xf32>
    %c0_27 = arith.constant 0 : index
    %c0_28 = arith.constant 0 : index
    %c0_29 = arith.constant 0 : index
    %44 = vector.load %arg9[%c0_27, %c0_28, %c0_29] : memref<2x1x32xf32, #tpu.memory_space<vmem>>, vector<1x1x32xf32>
    %45 = vector.shape_cast %44 : vector<1x1x32xf32> to vector<1x32xf32>
    %46 = vector.extract_strided_slice %39 {offsets = [0, 0], sizes = [5, 16], strides = [1, 1]} : vector<5x32xf32> to vector<5x16xf32>
    %47 = vector.extract_strided_slice %40 {offsets = [0, 0], sizes = [5, 16], strides = [1, 1]} : vector<5x32xf32> to vector<5x16xf32>
    %48 = vector.extract_strided_slice %41 {offsets = [0, 0], sizes = [5, 16], strides = [1, 1]} : vector<5x32xf32> to vector<5x16xf32>
    %49 = tpu.transpose %47, [1, 0] : vector<5x16xf32> -> vector<16x5xf32>
    %cst_30 = arith.constant dense<0.000000e+00> : vector<5x5xf32>
    %50 = tpu.matmul %46, %49, %cst_30 {dimension_numbers = #tpu.dot_dimension_numbers<[1], [0], [0], [1], [0, 0, 1, 1], [], []>} : vector<5x16xf32>, vector<16x5xf32>, vector<5x5xf32> -> vector<5x5xf32>
    %cst_31 = arith.constant 2.500000e-01 : f32
    %51 = vector.broadcast %cst_31 : f32 to vector<5x5xf32>
    %52 = arith.mulf %50, %51 : vector<5x5xf32>
    %cst_32 = arith.constant dense<0xFF800000> : vector<5xf32>
    %53 = vector.multi_reduction <maximumf>, %52, %cst_32 [1] : vector<5x5xf32> to vector<5xf32>
    %54 = vector.shape_cast %53 : vector<5xf32> to vector<5x1xf32>
    %55 = vector.broadcast %54 : vector<5x1xf32> to vector<5x5xf32>
    %56 = arith.subf %52, %55 : vector<5x5xf32>
    %57 = math.exp %56 : vector<5x5xf32>
    %cst_33 = arith.constant dense<0.000000e+00> : vector<5xf32>
    %58 = vector.multi_reduction <add>, %57, %cst_33 [1] : vector<5x5xf32> to vector<5xf32>
    %59 = vector.shape_cast %58 : vector<5xf32> to vector<5x1xf32>
    %60 = tpu.reciprocal %59 {approx = true} : vector<5x1xf32> -> vector<5x1xf32>
    %61 = vector.broadcast %60 : vector<5x1xf32> to vector<5x5xf32>
    %62 = arith.mulf %57, %61 : vector<5x5xf32>
    %cst_34 = arith.constant dense<0.000000e+00> : vector<5x16xf32>
    %63 = tpu.matmul %62, %48, %cst_34 {dimension_numbers = #tpu.dot_dimension_numbers<[1], [0], [0], [1], [0, 0, 1, 1], [], []>} : vector<5x5xf32>, vector<5x16xf32>, vector<5x16xf32> -> vector<5x16xf32>
    %64 = vector.extract_strided_slice %43 {offsets = [0, 0], sizes = [16, 32], strides = [1, 1]} : vector<32x32xf32> to vector<16x32xf32>
    %cst_35 = arith.constant dense<0.000000e+00> : vector<5x32xf32>
    %65 = tpu.matmul %63, %64, %cst_35 {dimension_numbers = #tpu.dot_dimension_numbers<[1], [0], [0], [1], [0, 0, 1, 1], [], []>} : vector<5x16xf32>, vector<16x32xf32>, vector<5x32xf32> -> vector<5x32xf32>
    %66 = vector.broadcast %45 : vector<1x32xf32> to vector<5x32xf32>
    %67 = arith.addf %66, %65 : vector<5x32xf32>
    %68 = vector.extract_strided_slice %39 {offsets = [0, 16], sizes = [5, 16], strides = [1, 1]} : vector<5x32xf32> to vector<5x16xf32>
    %69 = vector.extract_strided_slice %40 {offsets = [0, 16], sizes = [5, 16], strides = [1, 1]} : vector<5x32xf32> to vector<5x16xf32>
    %70 = vector.extract_strided_slice %41 {offsets = [0, 16], sizes = [5, 16], strides = [1, 1]} : vector<5x32xf32> to vector<5x16xf32>
    %71 = tpu.transpose %69, [1, 0] : vector<5x16xf32> -> vector<16x5xf32>
    %cst_36 = arith.constant dense<0.000000e+00> : vector<5x5xf32>
    %72 = tpu.matmul %68, %71, %cst_36 {dimension_numbers = #tpu.dot_dimension_numbers<[1], [0], [0], [1], [0, 0, 1, 1], [], []>} : vector<5x16xf32>, vector<16x5xf32>, vector<5x5xf32> -> vector<5x5xf32>
    %cst_37 = arith.constant 2.500000e-01 : f32
    %73 = vector.broadcast %cst_37 : f32 to vector<5x5xf32>
    %74 = arith.mulf %72, %73 : vector<5x5xf32>
    %cst_38 = arith.constant dense<0xFF800000> : vector<5xf32>
    %75 = vector.multi_reduction <maximumf>, %74, %cst_38 [1] : vector<5x5xf32> to vector<5xf32>
    %76 = vector.shape_cast %75 : vector<5xf32> to vector<5x1xf32>
    %77 = vector.broadcast %76 : vector<5x1xf32> to vector<5x5xf32>
    %78 = arith.subf %74, %77 : vector<5x5xf32>
    %79 = math.exp %78 : vector<5x5xf32>
    %cst_39 = arith.constant dense<0.000000e+00> : vector<5xf32>
    %80 = vector.multi_reduction <add>, %79, %cst_39 [1] : vector<5x5xf32> to vector<5xf32>
    %81 = vector.shape_cast %80 : vector<5xf32> to vector<5x1xf32>
    %82 = tpu.reciprocal %81 {approx = true} : vector<5x1xf32> -> vector<5x1xf32>
    %83 = vector.broadcast %82 : vector<5x1xf32> to vector<5x5xf32>
    %84 = arith.mulf %79, %83 : vector<5x5xf32>
    %cst_40 = arith.constant dense<0.000000e+00> : vector<5x16xf32>
    %85 = tpu.matmul %84, %70, %cst_40 {dimension_numbers = #tpu.dot_dimension_numbers<[1], [0], [0], [1], [0, 0, 1, 1], [], []>} : vector<5x5xf32>, vector<5x16xf32>, vector<5x16xf32> -> vector<5x16xf32>
    %86 = vector.extract_strided_slice %43 {offsets = [16, 0], sizes = [16, 32], strides = [1, 1]} : vector<32x32xf32> to vector<16x32xf32>
    %cst_41 = arith.constant dense<0.000000e+00> : vector<5x32xf32>
    %87 = tpu.matmul %85, %86, %cst_41 {dimension_numbers = #tpu.dot_dimension_numbers<[1], [0], [0], [1], [0, 0, 1, 1], [], []>} : vector<5x16xf32>, vector<16x32xf32>, vector<5x32xf32> -> vector<5x32xf32>
    %88 = arith.addf %67, %87 : vector<5x32xf32>
    %89 = arith.addf %5, %88 : vector<5x32xf32>
    %c0_42 = arith.constant 0 : index
    %c0_43 = arith.constant 0 : index
    %c0_44 = arith.constant 0 : index
    %90 = vector.load %arg10[%c0_42, %c0_43, %c0_44] : memref<2x1x32xf32, #tpu.memory_space<vmem>>, vector<1x1x32xf32>
    %91 = vector.shape_cast %90 : vector<1x1x32xf32> to vector<1x32xf32>
    %c0_45 = arith.constant 0 : index
    %c0_46 = arith.constant 0 : index
    %c0_47 = arith.constant 0 : index
    %92 = vector.load %arg11[%c0_45, %c0_46, %c0_47] : memref<2x1x32xf32, #tpu.memory_space<vmem>>, vector<1x1x32xf32>
    %93 = vector.shape_cast %92 : vector<1x1x32xf32> to vector<1x32xf32>
    %cst_48 = arith.constant dense<0.000000e+00> : vector<5xf32>
    %94 = vector.multi_reduction <add>, %89, %cst_48 [1] : vector<5x32xf32> to vector<5xf32>
    %95 = vector.shape_cast %94 : vector<5xf32> to vector<5x1xf32>
    %cst_49 = arith.constant 3.200000e+01 : f32
    %96 = vector.broadcast %cst_49 : f32 to vector<5x1xf32>
    %97 = arith.divf %95, %96 : vector<5x1xf32>
    %98 = vector.broadcast %97 : vector<5x1xf32> to vector<5x32xf32>
    %99 = arith.subf %89, %98 : vector<5x32xf32>
    %100 = arith.mulf %99, %99 : vector<5x32xf32>
    %cst_50 = arith.constant dense<0.000000e+00> : vector<5xf32>
    %101 = vector.multi_reduction <add>, %100, %cst_50 [1] : vector<5x32xf32> to vector<5xf32>
    %102 = vector.shape_cast %101 : vector<5xf32> to vector<5x1xf32>
    %cst_51 = arith.constant 3.200000e+01 : f32
    %103 = vector.broadcast %cst_51 : f32 to vector<5x1xf32>
    %104 = arith.divf %102, %103 : vector<5x1xf32>
    %105 = vector.broadcast %97 : vector<5x1xf32> to vector<5x32xf32>
    %106 = arith.subf %89, %105 : vector<5x32xf32>
    %cst_52 = arith.constant 9.99999996E-13 : f32
    %107 = vector.broadcast %cst_52 : f32 to vector<5x1xf32>
    %108 = arith.addf %104, %107 : vector<5x1xf32>
    %109 = math.rsqrt %108 : vector<5x1xf32>
    %110 = vector.broadcast %109 : vector<5x1xf32> to vector<5x32xf32>
    %111 = arith.mulf %106, %110 : vector<5x32xf32>
    %112 = vector.broadcast %91 : vector<1x32xf32> to vector<5x32xf32>
    %113 = arith.mulf %111, %112 : vector<5x32xf32>
    %114 = vector.broadcast %93 : vector<1x32xf32> to vector<5x32xf32>
    %115 = arith.addf %113, %114 : vector<5x32xf32>
    %c0_53 = arith.constant 0 : index
    %c0_54 = arith.constant 0 : index
    %c0_55 = arith.constant 0 : index
    %116 = vector.load %arg12[%c0_53, %c0_54, %c0_55] : memref<2x32x64xf32, #tpu.memory_space<vmem>>, vector<1x32x64xf32>
    %117 = vector.shape_cast %116 : vector<1x32x64xf32> to vector<32x64xf32>
    %cst_56 = arith.constant dense<0.000000e+00> : vector<5x64xf32>
    %118 = tpu.matmul %115, %117, %cst_56 {dimension_numbers = #tpu.dot_dimension_numbers<[1], [0], [0], [1], [0, 0, 1, 1], [], []>} : vector<5x32xf32>, vector<32x64xf32>, vector<5x64xf32> -> vector<5x64xf32>
    %c0_57 = arith.constant 0 : index
    %c0_58 = arith.constant 0 : index
    %c0_59 = arith.constant 0 : index
    %119 = vector.load %arg13[%c0_57, %c0_58, %c0_59] : memref<2x1x64xf32, #tpu.memory_space<vmem>>, vector<1x1x64xf32>
    %120 = vector.shape_cast %119 : vector<1x1x64xf32> to vector<1x64xf32>
    %121 = vector.broadcast %120 : vector<1x64xf32> to vector<5x64xf32>
    %122 = arith.addf %118, %121 : vector<5x64xf32>
    %cst_60 = arith.constant 5.000000e-01 : f32
    %123 = vector.broadcast %cst_60 : f32 to vector<5x64xf32>
    %124 = arith.mulf %123, %122 : vector<5x64xf32>
    %cst_61 = arith.constant 0.707106769 : f32
    %125 = vector.broadcast %cst_61 : f32 to vector<5x64xf32>
    %126 = arith.mulf %122, %125 : vector<5x64xf32>
    %127 = math.erf %126 : vector<5x64xf32>
    %cst_62 = arith.constant 1.000000e+00 : f32
    %128 = vector.broadcast %cst_62 : f32 to vector<5x64xf32>
    %129 = arith.addf %128, %127 : vector<5x64xf32>
    %130 = arith.mulf %124, %129 : vector<5x64xf32>
    %c0_63 = arith.constant 0 : index
    %c0_64 = arith.constant 0 : index
    %c0_65 = arith.constant 0 : index
    %131 = vector.load %arg14[%c0_63, %c0_64, %c0_65] : memref<2x64x32xf32, #tpu.memory_space<vmem>>, vector<1x64x32xf32>
    %132 = vector.shape_cast %131 : vector<1x64x32xf32> to vector<64x32xf32>
    %cst_66 = arith.constant dense<0.000000e+00> : vector<5x32xf32>
    %133 = tpu.matmul %130, %132, %cst_66 {dimension_numbers = #tpu.dot_dimension_numbers<[1], [0], [0], [1], [0, 0, 1, 1], [], []>} : vector<5x64xf32>, vector<64x32xf32>, vector<5x32xf32> -> vector<5x32xf32>
    %134 = arith.addf %89, %133 : vector<5x32xf32>
    %c0_67 = arith.constant 0 : index
    %c0_68 = arith.constant 0 : index
    %c0_69 = arith.constant 0 : index
    %135 = vector.load %arg15[%c0_67, %c0_68, %c0_69] : memref<2x1x32xf32, #tpu.memory_space<vmem>>, vector<1x1x32xf32>
    %136 = vector.shape_cast %135 : vector<1x1x32xf32> to vector<1x32xf32>
    %137 = vector.broadcast %136 : vector<1x32xf32> to vector<5x32xf32>
    %138 = arith.addf %134, %137 : vector<5x32xf32>
    %c1 = arith.constant 1 : index
    %c0_70 = arith.constant 0 : index
    %c0_71 = arith.constant 0 : index
    %139 = vector.load %arg4[%c1, %c0_70, %c0_71] : memref<2x1x32xf32, #tpu.memory_space<vmem>>, vector<1x1x32xf32>
    %140 = vector.shape_cast %139 : vector<1x1x32xf32> to vector<1x32xf32>
    %c1_72 = arith.constant 1 : index
    %c0_73 = arith.constant 0 : index
    %c0_74 = arith.constant 0 : index
    %141 = vector.load %arg5[%c1_72, %c0_73, %c0_74] : memref<2x1x32xf32, #tpu.memory_space<vmem>>, vector<1x1x32xf32>
    %142 = vector.shape_cast %141 : vector<1x1x32xf32> to vector<1x32xf32>
    %cst_75 = arith.constant dense<0.000000e+00> : vector<5xf32>
    %143 = vector.multi_reduction <add>, %138, %cst_75 [1] : vector<5x32xf32> to vector<5xf32>
    %144 = vector.shape_cast %143 : vector<5xf32> to vector<5x1xf32>
    %cst_76 = arith.constant 3.200000e+01 : f32
    %145 = vector.broadcast %cst_76 : f32 to vector<5x1xf32>
    %146 = arith.divf %144, %145 : vector<5x1xf32>
    %147 = vector.broadcast %146 : vector<5x1xf32> to vector<5x32xf32>
    %148 = arith.subf %138, %147 : vector<5x32xf32>
    %149 = arith.mulf %148, %148 : vector<5x32xf32>
    %cst_77 = arith.constant dense<0.000000e+00> : vector<5xf32>
    %150 = vector.multi_reduction <add>, %149, %cst_77 [1] : vector<5x32xf32> to vector<5xf32>
    %151 = vector.shape_cast %150 : vector<5xf32> to vector<5x1xf32>
    %cst_78 = arith.constant 3.200000e+01 : f32
    %152 = vector.broadcast %cst_78 : f32 to vector<5x1xf32>
    %153 = arith.divf %151, %152 : vector<5x1xf32>
    %154 = vector.broadcast %146 : vector<5x1xf32> to vector<5x32xf32>
    %155 = arith.subf %138, %154 : vector<5x32xf32>
    %cst_79 = arith.constant 9.99999996E-13 : f32
    %156 = vector.broadcast %cst_79 : f32 to vector<5x1xf32>
    %157 = arith.addf %153, %156 : vector<5x1xf32>
    %158 = math.rsqrt %157 : vector<5x1xf32>
    %159 = vector.broadcast %158 : vector<5x1xf32> to vector<5x32xf32>
    %160 = arith.mulf %155, %159 : vector<5x32xf32>
    %161 = vector.broadcast %140 : vector<1x32xf32> to vector<5x32xf32>
    %162 = arith.mulf %160, %161 : vector<5x32xf32>
    %163 = vector.broadcast %142 : vector<1x32xf32> to vector<5x32xf32>
    %164 = arith.addf %162, %163 : vector<5x32xf32>
    %c1_80 = arith.constant 1 : index
    %c0_81 = arith.constant 0 : index
    %c0_82 = arith.constant 0 : index
    %165 = vector.load %arg6[%c1_80, %c0_81, %c0_82] : memref<2x32x96xf32, #tpu.memory_space<vmem>>, vector<1x32x96xf32>
    %166 = vector.shape_cast %165 : vector<1x32x96xf32> to vector<32x96xf32>
    %cst_83 = arith.constant dense<0.000000e+00> : vector<5x96xf32>
    %167 = tpu.matmul %164, %166, %cst_83 {dimension_numbers = #tpu.dot_dimension_numbers<[1], [0], [0], [1], [0, 0, 1, 1], [], []>} : vector<5x32xf32>, vector<32x96xf32>, vector<5x96xf32> -> vector<5x96xf32>
    %c1_84 = arith.constant 1 : index
    %c0_85 = arith.constant 0 : index
    %c0_86 = arith.constant 0 : index
    %168 = vector.load %arg7[%c1_84, %c0_85, %c0_86] : memref<2x1x96xf32, #tpu.memory_space<vmem>>, vector<1x1x96xf32>
    %169 = vector.shape_cast %168 : vector<1x1x96xf32> to vector<1x96xf32>
    %170 = vector.broadcast %169 : vector<1x96xf32> to vector<5x96xf32>
    %171 = arith.addf %167, %170 : vector<5x96xf32>
    %172 = vector.extract_strided_slice %171 {offsets = [0, 0], sizes = [5, 32], strides = [1, 1]} : vector<5x96xf32> to vector<5x32xf32>
    %173 = vector.extract_strided_slice %171 {offsets = [0, 32], sizes = [5, 32], strides = [1, 1]} : vector<5x96xf32> to vector<5x32xf32>
    %174 = vector.extract_strided_slice %171 {offsets = [0, 64], sizes = [5, 32], strides = [1, 1]} : vector<5x96xf32> to vector<5x32xf32>
    %c1_87 = arith.constant 1 : index
    %c0_88 = arith.constant 0 : index
    %c0_89 = arith.constant 0 : index
    %175 = vector.load %arg8[%c1_87, %c0_88, %c0_89] : memref<2x32x32xf32, #tpu.memory_space<vmem>>, vector<1x32x32xf32>
    %176 = vector.shape_cast %175 : vector<1x32x32xf32> to vector<32x32xf32>
    %c1_90 = arith.constant 1 : index
    %c0_91 = arith.constant 0 : index
    %c0_92 = arith.constant 0 : index
    %177 = vector.load %arg9[%c1_90, %c0_91, %c0_92] : memref<2x1x32xf32, #tpu.memory_space<vmem>>, vector<1x1x32xf32>
    %178 = vector.shape_cast %177 : vector<1x1x32xf32> to vector<1x32xf32>
    %179 = vector.extract_strided_slice %172 {offsets = [0, 0], sizes = [5, 16], strides = [1, 1]} : vector<5x32xf32> to vector<5x16xf32>
    %180 = vector.extract_strided_slice %173 {offsets = [0, 0], sizes = [5, 16], strides = [1, 1]} : vector<5x32xf32> to vector<5x16xf32>
    %181 = vector.extract_strided_slice %174 {offsets = [0, 0], sizes = [5, 16], strides = [1, 1]} : vector<5x32xf32> to vector<5x16xf32>
    %182 = tpu.transpose %180, [1, 0] : vector<5x16xf32> -> vector<16x5xf32>
    %cst_93 = arith.constant dense<0.000000e+00> : vector<5x5xf32>
    %183 = tpu.matmul %179, %182, %cst_93 {dimension_numbers = #tpu.dot_dimension_numbers<[1], [0], [0], [1], [0, 0, 1, 1], [], []>} : vector<5x16xf32>, vector<16x5xf32>, vector<5x5xf32> -> vector<5x5xf32>
    %cst_94 = arith.constant 2.500000e-01 : f32
    %184 = vector.broadcast %cst_94 : f32 to vector<5x5xf32>
    %185 = arith.mulf %183, %184 : vector<5x5xf32>
    %cst_95 = arith.constant dense<0xFF800000> : vector<5xf32>
    %186 = vector.multi_reduction <maximumf>, %185, %cst_95 [1] : vector<5x5xf32> to vector<5xf32>
    %187 = vector.shape_cast %186 : vector<5xf32> to vector<5x1xf32>
    %188 = vector.broadcast %187 : vector<5x1xf32> to vector<5x5xf32>
    %189 = arith.subf %185, %188 : vector<5x5xf32>
    %190 = math.exp %189 : vector<5x5xf32>
    %cst_96 = arith.constant dense<0.000000e+00> : vector<5xf32>
    %191 = vector.multi_reduction <add>, %190, %cst_96 [1] : vector<5x5xf32> to vector<5xf32>
    %192 = vector.shape_cast %191 : vector<5xf32> to vector<5x1xf32>
    %193 = tpu.reciprocal %192 {approx = true} : vector<5x1xf32> -> vector<5x1xf32>
    %194 = vector.broadcast %193 : vector<5x1xf32> to vector<5x5xf32>
    %195 = arith.mulf %190, %194 : vector<5x5xf32>
    %cst_97 = arith.constant dense<0.000000e+00> : vector<5x16xf32>
    %196 = tpu.matmul %195, %181, %cst_97 {dimension_numbers = #tpu.dot_dimension_numbers<[1], [0], [0], [1], [0, 0, 1, 1], [], []>} : vector<5x5xf32>, vector<5x16xf32>, vector<5x16xf32> -> vector<5x16xf32>
    %197 = vector.extract_strided_slice %176 {offsets = [0, 0], sizes = [16, 32], strides = [1, 1]} : vector<32x32xf32> to vector<16x32xf32>
    %cst_98 = arith.constant dense<0.000000e+00> : vector<5x32xf32>
    %198 = tpu.matmul %196, %197, %cst_98 {dimension_numbers = #tpu.dot_dimension_numbers<[1], [0], [0], [1], [0, 0, 1, 1], [], []>} : vector<5x16xf32>, vector<16x32xf32>, vector<5x32xf32> -> vector<5x32xf32>
    %199 = vector.broadcast %178 : vector<1x32xf32> to vector<5x32xf32>
    %200 = arith.addf %199, %198 : vector<5x32xf32>
    %201 = vector.extract_strided_slice %172 {offsets = [0, 16], sizes = [5, 16], strides = [1, 1]} : vector<5x32xf32> to vector<5x16xf32>
    %202 = vector.extract_strided_slice %173 {offsets = [0, 16], sizes = [5, 16], strides = [1, 1]} : vector<5x32xf32> to vector<5x16xf32>
    %203 = vector.extract_strided_slice %174 {offsets = [0, 16], sizes = [5, 16], strides = [1, 1]} : vector<5x32xf32> to vector<5x16xf32>
    %204 = tpu.transpose %202, [1, 0] : vector<5x16xf32> -> vector<16x5xf32>
    %cst_99 = arith.constant dense<0.000000e+00> : vector<5x5xf32>
    %205 = tpu.matmul %201, %204, %cst_99 {dimension_numbers = #tpu.dot_dimension_numbers<[1], [0], [0], [1], [0, 0, 1, 1], [], []>} : vector<5x16xf32>, vector<16x5xf32>, vector<5x5xf32> -> vector<5x5xf32>
    %cst_100 = arith.constant 2.500000e-01 : f32
    %206 = vector.broadcast %cst_100 : f32 to vector<5x5xf32>
    %207 = arith.mulf %205, %206 : vector<5x5xf32>
    %cst_101 = arith.constant dense<0xFF800000> : vector<5xf32>
    %208 = vector.multi_reduction <maximumf>, %207, %cst_101 [1] : vector<5x5xf32> to vector<5xf32>
    %209 = vector.shape_cast %208 : vector<5xf32> to vector<5x1xf32>
    %210 = vector.broadcast %209 : vector<5x1xf32> to vector<5x5xf32>
    %211 = arith.subf %207, %210 : vector<5x5xf32>
    %212 = math.exp %211 : vector<5x5xf32>
    %cst_102 = arith.constant dense<0.000000e+00> : vector<5xf32>
    %213 = vector.multi_reduction <add>, %212, %cst_102 [1] : vector<5x5xf32> to vector<5xf32>
    %214 = vector.shape_cast %213 : vector<5xf32> to vector<5x1xf32>
    %215 = tpu.reciprocal %214 {approx = true} : vector<5x1xf32> -> vector<5x1xf32>
    %216 = vector.broadcast %215 : vector<5x1xf32> to vector<5x5xf32>
    %217 = arith.mulf %212, %216 : vector<5x5xf32>
    %cst_103 = arith.constant dense<0.000000e+00> : vector<5x16xf32>
    %218 = tpu.matmul %217, %203, %cst_103 {dimension_numbers = #tpu.dot_dimension_numbers<[1], [0], [0], [1], [0, 0, 1, 1], [], []>} : vector<5x5xf32>, vector<5x16xf32>, vector<5x16xf32> -> vector<5x16xf32>
    %219 = vector.extract_strided_slice %176 {offsets = [16, 0], sizes = [16, 32], strides = [1, 1]} : vector<32x32xf32> to vector<16x32xf32>
    %cst_104 = arith.constant dense<0.000000e+00> : vector<5x32xf32>
    %220 = tpu.matmul %218, %219, %cst_104 {dimension_numbers = #tpu.dot_dimension_numbers<[1], [0], [0], [1], [0, 0, 1, 1], [], []>} : vector<5x16xf32>, vector<16x32xf32>, vector<5x32xf32> -> vector<5x32xf32>
    %221 = arith.addf %200, %220 : vector<5x32xf32>
    %222 = arith.addf %138, %221 : vector<5x32xf32>
    %c1_105 = arith.constant 1 : index
    %c0_106 = arith.constant 0 : index
    %c0_107 = arith.constant 0 : index
    %223 = vector.load %arg10[%c1_105, %c0_106, %c0_107] : memref<2x1x32xf32, #tpu.memory_space<vmem>>, vector<1x1x32xf32>
    %224 = vector.shape_cast %223 : vector<1x1x32xf32> to vector<1x32xf32>
    %c1_108 = arith.constant 1 : index
    %c0_109 = arith.constant 0 : index
    %c0_110 = arith.constant 0 : index
    %225 = vector.load %arg11[%c1_108, %c0_109, %c0_110] : memref<2x1x32xf32, #tpu.memory_space<vmem>>, vector<1x1x32xf32>
    %226 = vector.shape_cast %225 : vector<1x1x32xf32> to vector<1x32xf32>
    %cst_111 = arith.constant dense<0.000000e+00> : vector<5xf32>
    %227 = vector.multi_reduction <add>, %222, %cst_111 [1] : vector<5x32xf32> to vector<5xf32>
    %228 = vector.shape_cast %227 : vector<5xf32> to vector<5x1xf32>
    %cst_112 = arith.constant 3.200000e+01 : f32
    %229 = vector.broadcast %cst_112 : f32 to vector<5x1xf32>
    %230 = arith.divf %228, %229 : vector<5x1xf32>
    %231 = vector.broadcast %230 : vector<5x1xf32> to vector<5x32xf32>
    %232 = arith.subf %222, %231 : vector<5x32xf32>
    %233 = arith.mulf %232, %232 : vector<5x32xf32>
    %cst_113 = arith.constant dense<0.000000e+00> : vector<5xf32>
    %234 = vector.multi_reduction <add>, %233, %cst_113 [1] : vector<5x32xf32> to vector<5xf32>
    %235 = vector.shape_cast %234 : vector<5xf32> to vector<5x1xf32>
    %cst_114 = arith.constant 3.200000e+01 : f32
    %236 = vector.broadcast %cst_114 : f32 to vector<5x1xf32>
    %237 = arith.divf %235, %236 : vector<5x1xf32>
    %238 = vector.broadcast %230 : vector<5x1xf32> to vector<5x32xf32>
    %239 = arith.subf %222, %238 : vector<5x32xf32>
    %cst_115 = arith.constant 9.99999996E-13 : f32
    %240 = vector.broadcast %cst_115 : f32 to vector<5x1xf32>
    %241 = arith.addf %237, %240 : vector<5x1xf32>
    %242 = math.rsqrt %241 : vector<5x1xf32>
    %243 = vector.broadcast %242 : vector<5x1xf32> to vector<5x32xf32>
    %244 = arith.mulf %239, %243 : vector<5x32xf32>
    %245 = vector.broadcast %224 : vector<1x32xf32> to vector<5x32xf32>
    %246 = arith.mulf %244, %245 : vector<5x32xf32>
    %247 = vector.broadcast %226 : vector<1x32xf32> to vector<5x32xf32>
    %248 = arith.addf %246, %247 : vector<5x32xf32>
    %c1_116 = arith.constant 1 : index
    %c0_117 = arith.constant 0 : index
    %c0_118 = arith.constant 0 : index
    %249 = vector.load %arg12[%c1_116, %c0_117, %c0_118] : memref<2x32x64xf32, #tpu.memory_space<vmem>>, vector<1x32x64xf32>
    %250 = vector.shape_cast %249 : vector<1x32x64xf32> to vector<32x64xf32>
    %cst_119 = arith.constant dense<0.000000e+00> : vector<5x64xf32>
    %251 = tpu.matmul %248, %250, %cst_119 {dimension_numbers = #tpu.dot_dimension_numbers<[1], [0], [0], [1], [0, 0, 1, 1], [], []>} : vector<5x32xf32>, vector<32x64xf32>, vector<5x64xf32> -> vector<5x64xf32>
    %c1_120 = arith.constant 1 : index
    %c0_121 = arith.constant 0 : index
    %c0_122 = arith.constant 0 : index
    %252 = vector.load %arg13[%c1_120, %c0_121, %c0_122] : memref<2x1x64xf32, #tpu.memory_space<vmem>>, vector<1x1x64xf32>
    %253 = vector.shape_cast %252 : vector<1x1x64xf32> to vector<1x64xf32>
    %254 = vector.broadcast %253 : vector<1x64xf32> to vector<5x64xf32>
    %255 = arith.addf %251, %254 : vector<5x64xf32>
    %cst_123 = arith.constant 5.000000e-01 : f32
    %256 = vector.broadcast %cst_123 : f32 to vector<5x64xf32>
    %257 = arith.mulf %256, %255 : vector<5x64xf32>
    %cst_124 = arith.constant 0.707106769 : f32
    %258 = vector.broadcast %cst_124 : f32 to vector<5x64xf32>
    %259 = arith.mulf %255, %258 : vector<5x64xf32>
    %260 = math.erf %259 : vector<5x64xf32>
    %cst_125 = arith.constant 1.000000e+00 : f32
    %261 = vector.broadcast %cst_125 : f32 to vector<5x64xf32>
    %262 = arith.addf %261, %260 : vector<5x64xf32>
    %263 = arith.mulf %257, %262 : vector<5x64xf32>
    %c1_126 = arith.constant 1 : index
    %c0_127 = arith.constant 0 : index
    %c0_128 = arith.constant 0 : index
    %264 = vector.load %arg14[%c1_126, %c0_127, %c0_128] : memref<2x64x32xf32, #tpu.memory_space<vmem>>, vector<1x64x32xf32>
    %265 = vector.shape_cast %264 : vector<1x64x32xf32> to vector<64x32xf32>
    %cst_129 = arith.constant dense<0.000000e+00> : vector<5x32xf32>
    %266 = tpu.matmul %263, %265, %cst_129 {dimension_numbers = #tpu.dot_dimension_numbers<[1], [0], [0], [1], [0, 0, 1, 1], [], []>} : vector<5x64xf32>, vector<64x32xf32>, vector<5x32xf32> -> vector<5x32xf32>
    %267 = arith.addf %222, %266 : vector<5x32xf32>
    %c1_130 = arith.constant 1 : index
    %c0_131 = arith.constant 0 : index
    %c0_132 = arith.constant 0 : index
    %268 = vector.load %arg15[%c1_130, %c0_131, %c0_132] : memref<2x1x32xf32, #tpu.memory_space<vmem>>, vector<1x1x32xf32>
    %269 = vector.shape_cast %268 : vector<1x1x32xf32> to vector<1x32xf32>
    %270 = vector.broadcast %269 : vector<1x32xf32> to vector<5x32xf32>
    %271 = arith.addf %267, %270 : vector<5x32xf32>
    %c0_133 = arith.constant 0 : index
    %c0_134 = arith.constant 0 : index
    %272 = vector.load %arg16[%c0_133, %c0_134] : memref<1x32xf32, #tpu.memory_space<vmem>>, vector<1x32xf32>
    %c0_135 = arith.constant 0 : index
    %c0_136 = arith.constant 0 : index
    %273 = vector.load %arg17[%c0_135, %c0_136] : memref<1x32xf32, #tpu.memory_space<vmem>>, vector<1x32xf32>
    %cst_137 = arith.constant dense<0.000000e+00> : vector<5xf32>
    %274 = vector.multi_reduction <add>, %271, %cst_137 [1] : vector<5x32xf32> to vector<5xf32>
    %275 = vector.shape_cast %274 : vector<5xf32> to vector<5x1xf32>
    %cst_138 = arith.constant 3.200000e+01 : f32
    %276 = vector.broadcast %cst_138 : f32 to vector<5x1xf32>
    %277 = arith.divf %275, %276 : vector<5x1xf32>
    %278 = vector.broadcast %277 : vector<5x1xf32> to vector<5x32xf32>
    %279 = arith.subf %271, %278 : vector<5x32xf32>
    %280 = arith.mulf %279, %279 : vector<5x32xf32>
    %cst_139 = arith.constant dense<0.000000e+00> : vector<5xf32>
    %281 = vector.multi_reduction <add>, %280, %cst_139 [1] : vector<5x32xf32> to vector<5xf32>
    %282 = vector.shape_cast %281 : vector<5xf32> to vector<5x1xf32>
    %cst_140 = arith.constant 3.200000e+01 : f32
    %283 = vector.broadcast %cst_140 : f32 to vector<5x1xf32>
    %284 = arith.divf %282, %283 : vector<5x1xf32>
    %285 = vector.broadcast %277 : vector<5x1xf32> to vector<5x32xf32>
    %286 = arith.subf %271, %285 : vector<5x32xf32>
    %cst_141 = arith.constant 9.99999996E-13 : f32
    %287 = vector.broadcast %cst_141 : f32 to vector<5x1xf32>
    %288 = arith.addf %284, %287 : vector<5x1xf32>
    %289 = math.rsqrt %288 : vector<5x1xf32>
    %290 = vector.broadcast %289 : vector<5x1xf32> to vector<5x32xf32>
    %291 = arith.mulf %286, %290 : vector<5x32xf32>
    %292 = vector.broadcast %272 : vector<1x32xf32> to vector<5x32xf32>
    %293 = arith.mulf %291, %292 : vector<5x32xf32>
    %294 = vector.broadcast %273 : vector<1x32xf32> to vector<5x32xf32>
    %295 = arith.addf %293, %294 : vector<5x32xf32>
    %296 = vector.extract_strided_slice %295 {offsets = [0, 0], sizes = [1, 32], strides = [1, 1]} : vector<5x32xf32> to vector<1x32xf32>
    %c0_142 = arith.constant 0 : index
    %c0_143 = arith.constant 0 : index
    %297 = vector.load %arg18[%c0_142, %c0_143] : memref<32x10xf32, #tpu.memory_space<vmem>>, vector<32x10xf32>
    %cst_144 = arith.constant dense<0.000000e+00> : vector<1x10xf32>
    %298 = tpu.matmul %296, %297, %cst_144 {dimension_numbers = #tpu.dot_dimension_numbers<[1], [0], [0], [1], [0, 0, 1, 1], [], []>} : vector<1x32xf32>, vector<32x10xf32>, vector<1x10xf32> -> vector<1x10xf32>
    %c0_145 = arith.constant 0 : index
    %c0_146 = arith.constant 0 : index
    %299 = vector.load %arg19[%c0_145, %c0_146] : memref<1x10xf32, #tpu.memory_space<vmem>>, vector<1x10xf32>
    %300 = arith.addf %298, %299 : vector<1x10xf32>
    %cst_147 = arith.constant dense<0xFF800000> : vector<1xf32>
    %301 = vector.multi_reduction <maximumf>, %300, %cst_147 [1] : vector<1x10xf32> to vector<1xf32>
    %302 = vector.shape_cast %301 : vector<1xf32> to vector<1x1xf32>
    %303 = vector.broadcast %302 : vector<1x1xf32> to vector<1x10xf32>
    %304 = arith.subf %300, %303 : vector<1x10xf32>
    %305 = math.exp %304 : vector<1x10xf32>
    %cst_148 = arith.constant dense<0.000000e+00> : vector<1xf32>
    %306 = vector.multi_reduction <add>, %305, %cst_148 [1] : vector<1x10xf32> to vector<1xf32>
    %307 = vector.shape_cast %306 : vector<1xf32> to vector<1x1xf32>
    %308 = vector.broadcast %307 : vector<1x1xf32> to vector<1x10xf32>
    %309 = arith.divf %305, %308 : vector<1x10xf32>
    %c0_149 = arith.constant 0 : index
    %c0_150 = arith.constant 0 : index
    %c0_151 = arith.constant 0 : index
    %310 = vector.load %arg20[%c0_149, %c0_150, %c0_151] : memref<1x1x10xf32, #tpu.memory_space<vmem>>, vector<1x1x10xf32>
    %311 = vector.shape_cast %310 : vector<1x1x10xf32> to vector<1x10xf32>
    %312 = vector.shape_cast %309 : vector<1x10xf32> to vector<1x1x10xf32>
    tpu.vector_store %arg20[%c0_149, %c0_150, %c0_151], %312 {strides = array<i32>} : memref<1x1x10xf32, #tpu.memory_space<vmem>>, vector<1x1x10xf32>,
    return
  }
  func.func @transform_0(%arg0: i32) -> (i32, i32, i32) {
    %c0_i32 = arith.constant 0 : i32
    %c0_i32_0 = arith.constant 0 : i32
    %c0_i32_1 = arith.constant 0 : i32
    return %arg0, %c0_i32, %c0_i32_0 : i32, i32, i32
  }
  func.func @transform_1(%arg0: i32) -> (i32, i32) {
    %c0_i32 = arith.constant 0 : i32
    %c0_i32_0 = arith.constant 0 : i32
    %c0_i32_1 = arith.constant 0 : i32
    return %c0_i32, %c0_i32_0 : i32, i32
  }
  func.func @transform_2(%arg0: i32) -> (i32, i32) {
    %c0_i32 = arith.constant 0 : i32
    %c0_i32_0 = arith.constant 0 : i32
    %c0_i32_1 = arith.constant 0 : i32
    return %c0_i32, %c0_i32_0 : i32, i32
  }
  func.func @transform_3(%arg0: i32) -> (i32, i32, i32) {
    %c0_i32 = arith.constant 0 : i32
    %c0_i32_0 = arith.constant 0 : i32
    %c0_i32_1 = arith.constant 0 : i32
    %c0_i32_2 = arith.constant 0 : i32
    return %c0_i32, %c0_i32_0, %c0_i32_1 : i32, i32, i32
  }
  func.func @transform_4(%arg0: i32) -> (i32, i32, i32) {
    %c0_i32 = arith.constant 0 : i32
    %c0_i32_0 = arith.constant 0 : i32
    %c0_i32_1 = arith.constant 0 : i32
    %c0_i32_2 = arith.constant 0 : i32
    return %c0_i32, %c0_i32_0, %c0_i32_1 : i32, i32, i32
  }
  func.func @transform_5(%arg0: i32) -> (i32, i32, i32) {
    %c0_i32 = arith.constant 0 : i32
    %c0_i32_0 = arith.constant 0 : i32
    %c0_i32_1 = arith.constant 0 : i32
    %c0_i32_2 = arith.constant 0 : i32
    return %c0_i32, %c0_i32_0, %c0_i32_1 : i32, i32, i32
  }
  func.func @transform_6(%arg0: i32) -> (i32, i32, i32) {
    %c0_i32 = arith.constant 0 : i32
    %c0_i32_0 = arith.constant 0 : i32
    %c0_i32_1 = arith.constant 0 : i32
    %c0_i32_2 = arith.constant 0 : i32
    return %c0_i32, %c0_i32_0, %c0_i32_1 : i32, i32, i32
  }
  func.func @transform_7(%arg0: i32) -> (i32, i32, i32) {
    %c0_i32 = arith.constant 0 : i32
    %c0_i32_0 = arith.constant 0 : i32
    %c0_i32_1 = arith.constant 0 : i32
    %c0_i32_2 = arith.constant 0 : i32
    return %c0_i32, %c0_i32_0, %c0_i32_1 : i32, i32, i32
  }
  func.func @transform_8(%arg0: i32) -> (i32, i32, i32) {
    %c0_i32 = arith.constant 0 : i32
    %c0_i32_0 = arith.constant 0 : i32
    %c0_i32_1 = arith.constant 0 : i32
    %c0_i32_2 = arith.constant 0 : i32
    return %c0_i32, %c0_i32_0, %c0_i32_1 : i32, i32, i32
  }
  func.func @transform_9(%arg0: i32) -> (i32, i32, i32) {
    %c0_i32 = arith.constant 0 : i32
    %c0_i32_0 = arith.constant 0 : i32
    %c0_i32_1 = arith.constant 0 : i32
    %c0_i32_2 = arith.constant 0 : i32
    return %c0_i32, %c0_i32_0, %c0_i32_1 : i32, i32, i32
  }
  func.func @transform_10(%arg0: i32) -> (i32, i32, i32) {
    %c0_i32 = arith.constant 0 : i32
    %c0_i32_0 = arith.constant 0 : i32
    %c0_i32_1 = arith.constant 0 : i32
    %c0_i32_2 = arith.constant 0 : i32
    return %c0_i32, %c0_i32_0, %c0_i32_1 : i32, i32, i32
  }
  func.func @transform_11(%arg0: i32) -> (i32, i32, i32) {
    %c0_i32 = arith.constant 0 : i32
    %c0_i32_0 = arith.constant 0 : i32
    %c0_i32_1 = arith.constant 0 : i32
    %c0_i32_2 = arith.constant 0 : i32
    return %c0_i32, %c0_i32_0, %c0_i32_1 : i32, i32, i32
  }
  func.func @transform_12(%arg0: i32) -> (i32, i32, i32) {
    %c0_i32 = arith.constant 0 : i32
    %c0_i32_0 = arith.constant 0 : i32
    %c0_i32_1 = arith.constant 0 : i32
    %c0_i32_2 = arith.constant 0 : i32
    return %c0_i32, %c0_i32_0, %c0_i32_1 : i32, i32, i32
  }
  func.func @transform_13(%arg0: i32) -> (i32, i32, i32) {
    %c0_i32 = arith.constant 0 : i32
    %c0_i32_0 = arith.constant 0 : i32
    %c0_i32_1 = arith.constant 0 : i32
    %c0_i32_2 = arith.constant 0 : i32
    return %c0_i32, %c0_i32_0, %c0_i32_1 : i32, i32, i32
  }
  func.func @transform_14(%arg0: i32) -> (i32, i32, i32) {
    %c0_i32 = arith.constant 0 : i32
    %c0_i32_0 = arith.constant 0 : i32
    %c0_i32_1 = arith.constant 0 : i32
    %c0_i32_2 = arith.constant 0 : i32
    return %c0_i32, %c0_i32_0, %c0_i32_1 : i32, i32, i32
  }
  func.func @transform_15(%arg0: i32) -> (i32, i32) {
    %c0_i32 = arith.constant 0 : i32
    %c0_i32_0 = arith.constant 0 : i32
    %c0_i32_1 = arith.constant 0 : i32
    return %c0_i32, %c0_i32_0 : i32, i32
  }
  func.func @transform_16(%arg0: i32) -> (i32, i32) {
    %c0_i32 = arith.constant 0 : i32
    %c0_i32_0 = arith.constant 0 : i32
    %c0_i32_1 = arith.constant 0 : i32
    return %c0_i32, %c0_i32_0 : i32, i32
  }
  func.func @transform_17(%arg0: i32) -> (i32, i32) {
    %c0_i32 = arith.constant 0 : i32
    %c0_i32_0 = arith.constant 0 : i32
    %c0_i32_1 = arith.constant 0 : i32
    return %c0_i32, %c0_i32_0 : i32, i32
  }
  func.func @transform_18(%arg0: i32) -> (i32, i32) {
    %c0_i32 = arith.constant 0 : i32
    %c0_i32_0 = arith.constant 0 : i32
    %c0_i32_1 = arith.constant 0 : i32
    return %c0_i32, %c0_i32_0 : i32, i32
  }
  func.func @transform_19(%arg0: i32) -> (i32, i32, i32) {
    %c0_i32 = arith.constant 0 : i32
    %c0_i32_0 = arith.constant 0 : i32
    %c0_i32_1 = arith.constant 0 : i32
    return %arg0, %c0_i32, %c0_i32_0 : i32, i32, i32
  }
}

</mosaic_0001>

<bundles_post_ra>
// kernel: vit_forward.1
= control target key start
LH: loop header
LB: loop body
LE: loop exit
PB: predicated region body
PF: predicated region fallthrough
CT: control target
= control target key end

     0   :  { %s3735_s0 = inlined_call_operand.vmem [shape: f32[2,5,192], index: 0, kind: input, shape index: {}]   ;;  %s3736_s1 = inlined_call_operand.vmem [shape: f32[5,32], index: 1, kind: input, shape index: {}]   ;;  %s3737_s2 = inlined_call_operand.vmem [shape: f32[192,32], index: 2, kind: input, shape index: {}]   ;;  %s3738_s3 = inlined_call_operand.vmem [shape: f32[2,1,32], index: 3, kind: input, shape index: {}]   ;;  %s3739_s4 = inlined_call_operand.vmem [shape: f32[2,1,32], index: 4, kind: input, shape index: {}]   ;;  %s3740_s5 = inlined_call_operand.vmem [shape: f32[2,32,96], index: 5, kind: input, shape index: {}]   ;;  %s3741_s6 = inlined_call_operand.vmem [shape: f32[2,1,96], index: 6, kind: input, shape index: {}]   ;;  %s3742_s7 = inlined_call_operand.vmem [shape: f32[2,32,32], index: 7, kind: input, shape index: {}]   ;;  %s3743_s8 = inlined_call_operand.vmem [shape: f32[2,1,32], index: 8, kind: input, shape index: {}]   ;;  %s3744_s9 = inlined_call_operand.vmem [shape: f32[2,1,32], index: 9, kind: input, shape index: {}]   ;;  %s3745_s10 = inlined_call_operand.vmem [shape: f32[2,1,32], index: 10, kind: input, shape index: {}]   ;;  %s3746_s11 = inlined_call_operand.vmem [shape: f32[2,32,64], index: 11, kind: input, shape index: {}]   ;;  %s3747_s12 = inlined_call_operand.vmem [shape: f32[2,1,64], index: 12, kind: input, shape index: {}]   ;;  %s3748_s13 = inlined_call_operand.vmem [shape: f32[2,64,32], index: 13, kind: input, shape index: {}]   ;;  %s3749_s14 = inlined_call_operand.vmem [shape: f32[2,1,32], index: 14, kind: input, shape index: {}]   ;;  %s3750_s15 = inlined_call_operand.vmem [shape: f32[1,32], index: 15, kind: input, shape index: {}]   ;;  %s3751_s16 = inlined_call_operand.vmem [shape: f32[1,32], index: 16, kind: input, shape index: {}]   ;;  %s3752_s17 = inlined_call_operand.vmem [shape: f32[32,10], index: 17, kind: input, shape index: {}]   ;;  %s3753_s18 = inlined_call_operand.vmem [shape: f32[1,10], index: 18, kind: input, shape index: {}]   ;;  %s3754_s19 = inlined_call_operand.hbm [shape: f32[2,1,10], index: 19, kind: output, shape index: {}]  }
   0x1   :  { %3766 = sst [smem:[#allocation11_spill]] %s3735_s0 }
   0x2   :  { %3767 = sst [smem:[#allocation12_spill]] %s3736_s1 }
   0x3   :  { %3768 = sst [smem:[#allocation13_spill]] %s3737_s2 }
   0x4   :  { %3769 = sst [smem:[#allocation14_spill]] %s3738_s3 }
   0x5   :  { %3770 = sst [smem:[#allocation15_spill]] %s3739_s4 }
   0x6   :  { %3771 = sst [smem:[#allocation16_spill]] %s3754_s19 }
   0x7   :  { %24 = vsyncpa [#allocation3], 0 }
   0x8   :  { %26 = vsyncpa [#allocation3 + $0x1], 0  ;;  %s3208_s0 = smov 0   ;;  %s3210_s30 = smov 0  }
   0x9   :  { %s3212_s20 = smov 0   ;;  %s3214_s21 = smov 0  }
   0xa LB: > { %3772 = sst [smem:[#allocation5_spill]] %s3085_s0  ;;  %s3229_s1 = sadd.s32 4294967295, %s3097_s21   ;;  %s3097_s21 = sphi %s3214_s21, %s3792_s21   ;;  %s3093_s20 = sphi %s3212_s20, %s3794_s20   ;;  %s3089_s30 = sphi %s3210_s30, %s3796_s30   ;;  %s3085_s0 = sphi %s3208_s0, %s3795_s0  }
   0xb   : > { %3773 = sst [smem:[#allocation6_spill]] %s3093_s20  ;;  %s2536_s22 = sadd.s32 4294967294, %s3097_s21  }
   0xc   : > { %3774 = sst [smem:[#allocation7_spill]] %s3097_s21  ;;  %s3233_s2 = sadd.s32 1, %s3097_s21  }
   0xd   : > { %3775 = sst [smem:[#allocation8_spill]] %s3233_s2  ;;  %s443_s23 = sadd.s32 1, %s3093_s20 }
   0xe   : > { %s440_s24 = ssub.s32 %s3097_s21, %s3233_s2  ;;  %p453_p0 = scmp.ne.s32.totalorder %s3093_s20, %s3089_s30 }
   0xf   : > { %p441_p1 = scmp.eq.s32.totalorder %s440_s24, 0  ;;  %p454_p2 = scmp.eq.s32.totalorder %s3229_s1, 1 }
  0x10   : > { %p459_p3 = scmp.ne.s32.totalorder %s3089_s30, %s3085_s0  ;;  %p460_p4 = scmp.eq.s32.totalorder %s2536_s22, 1 }
  0x11   : > { %s3244_s25 = scalar_select %p441_p1, %s3093_s20, %s443_s23  }
  0x12   : > { %p3246_p5 = por %p454_p2, %p453_p0  ;;  %p3250_p6 = por %p460_p4, %p459_p3 }
  0x13   : > { %3776 = sst [smem:[#allocation9_spill]] %s3244_s25  ;;  %p2539_p7 = scmp.ge.s32.totalorder %s3097_s21, 1 }
  0x14   : > { %s3778_s26 = scalar_select %p3250_p6, 1, 0 }
  0x15   : > { %p540_p8 = scmp.lt.s32.totalorder %s3097_s21, 3 }
  0x16   : > { %3779 = sst [smem:[#allocation10_spill]] %s3778_s26 }
  0x17   : > { %p541_p9 = pnand %p2539_p7, %p540_p8 }
  0x18   : > { %s3780_s29 = sld [smem:[#allocation13_spill]] (!%p541_p9)  ;;  %p595_p10 = scmp.lt.s32.totalorder (!%p541_p9), %s3229_s1, 1  ;;  %v3099_v3 = vmov (!%p541_p9), 0.0|0.0   ;;  %vm627_vm0 = vcmask (!%p541_p9), 523264   ;;  %vm703_vm1 = vcmask (!%p541_p9), 258048   ;;  %v732_v49 = vld [vmem:[%s3740_s5] sm:$0xff] (!%p541_p9) }
  0x19   : > { %544 = sbr.rel (%p541_p9) target bundleno = 7147 (0x1beb), region = 96  ;;  %2852 = vmatprep.subr.bf16.mxu0 (!%p541_p9), %v3099_v3  ;;  %2888 = vmatprep.subr.bf16.mxu1 (!%p541_p9), %v3099_v3  ;;  %s3781_s20 = sld [smem:[#allocation11_spill]] (!%p541_p9)  ;;  %v733_v50 = vld [vmem:[%s3740_s5 + $0x8] sm:$0xff] (!%p541_p9)  ;;  %v734_v51 = vld [vmem:[%s3740_s5 + $0x10] sm:$0xff] (!%p541_p9)  ;;  %v735_v53 = vld [vmem:[%s3740_s5 + $0x18] sm:$0xff] (!%p541_p9)  ;;  %vm3100_vm2 = vmmov (!%p541_p9), 0  }
  0x1a   : > { %s3782_s26 = sld [smem:[#allocation12_spill]] (!%p541_p9)  ;;  %v2889_v52 = vpack.c.bf16 (!%p541_p9), %v733_v50, %v732_v49  ;;  %v3101_v54 = vmov (!%p541_p9), 0.0   ;;  %v2892_v55 = vpack.c.bf16 (!%p541_p9), %v735_v53, %v734_v51  ;;  %s3783_s0 = sld [smem:[#allocation14_spill]] (!%p541_p9)  ;;  %vm743_vm3 = vcmask (!%p541_p9), 261120  }
  0x1b   : > { %2699 = vmatprep.mubr.msk.f32.mxu1 (!%p541_p9), %vm3100_vm2, %v3101_v54  ;;  %s3785_s4 = sld [smem:[#allocation15_spill]] (!%p541_p9)  ;;  %s3102_s21 = smov (!%p541_p9), 96   ;;  %vm825_vm4 = vcmask (!%p541_p9), 130048   ;;  %vm901_vm5 = vcmask (!%p541_p9), 36864   ;;  %vm919_vm6 = vcmask (!%p541_p9), 1044480   ;;  %vm915_vm7 = vcmask (!%p541_p9), 39936  }
  0x1c   : > { %2890 = vmatpush3.bf16.msra.mxu1 (!%p541_p9), %v2889_v52  ;;  %s3765_s23 = smov (!%p541_p9), 64   ;;  %s3787_s25 = smov (!%p541_p9), 48   ;;  %vm2455_vm8 = vcmask (!%p541_p9), 73728  }
  0x1d   : > { %2891 = vmatprep.subr.bf16.mxu1 (!%p541_p9), %v3099_v3 }
  0x1e   : > { %v602_v0 = vld [vmem:[%s3780_s29] sm:$0xff] (!%p541_p9)  ;;  %v603_v1 = vld [vmem:[%s3780_s29 + $0x8] sm:$0xff] (!%p541_p9)  ;;  %v604_v2 = vld [vmem:[%s3780_s29 + $0x10] sm:$0xff] (!%p541_p9) }
  0x1f   : > { %v2853_v4 = vpack.c.bf16 (!%p541_p9), %v603_v1, %v602_v0  ;;  %v605_v5 = vld [vmem:[%s3780_s29 + $0x18] sm:$0xff] (!%p541_p9)  ;;  %v606_v7 = vld [vmem:[%s3780_s29 + $0x20] sm:$0xff] (!%p541_p9)  ;;  %v607_v8 = vld [vmem:[%s3780_s29 + $0x28] sm:$0xff] (!%p541_p9) }
  0x20   : > { %s596_s27 = scalar_select %p595_p10, %s3229_s1, 1  ;;  %v2856_v6 = vpack.c.bf16 %v605_v5, %v604_v2  ;;  %v2859_v9 = vpack.c.bf16 %v607_v8, %v606_v7  ;;  %v608_v10 = vld [vmem:[%s3780_s29 + $0x30] sm:$0xff]  ;;  %v609_v11 = vld [vmem:[%s3780_s29 + $0x38] sm:$0xff]  ;;  %v610_v14 = vld [vmem:[%s3780_s29 + $0x40] sm:$0xff]  ;;  %2893 = vmatpush3.bf16.msra.mxu1 %v2892_v55 }
  0x21   : > { %2854 = vmatpush1.bf16.msra.mxu0 %v2853_v4  ;;  %v2862_v13 = vpack.c.bf16 %v609_v11, %v608_v10  ;;  %v611_v15 = vld [vmem:[%s3780_s29 + $0x48] sm:$0xff]  ;;  %v612_v17 = vld [vmem:[%s3780_s29 + $0x50] sm:$0xff]  ;;  %v613_v18 = vld [vmem:[%s3780_s29 + $0x58] sm:$0xff]  ;;  %2702 = vmatprep.subr.mxu1 %v3101_v54 }
  0x22   : > { %2855 = vmatprep.subr.bf16.mxu0 %v3099_v3  ;;  %s2619_s24 = sshll.u32 %s596_s27, 4  ;;  %v2865_v16 = vpack.c.bf16 %v611_v15, %v610_v14  ;;  %v2868_v19 = vpack.c.bf16 %v613_v18, %v612_v17  ;;  %v614_v20 = vld [vmem:[%s3780_s29 + $0x60] sm:$0xff]  ;;  %v615_v21 = vld [vmem:[%s3780_s29 + $0x68] sm:$0xff]  ;;  %v616_v23 = vld [vmem:[%s3780_s29 + $0x70] sm:$0xff]  ;;  %s3764_s27 = smov 48  }
  0x23   : > { %s3282_s2 = scalar_lea.vmem %s3781_s20, %s2619_s24  ;;  %v2871_v22 = vpack.c.bf16 %v615_v21, %v614_v20  ;;  %v617_v24 = vld [vmem:[%s3780_s29 + $0x78] sm:$0xff]  ;;  %v618_v26 = vld [vmem:[%s3780_s29 + $0x80] sm:$0xff]  ;;  %v619_v27 = vld [vmem:[%s3780_s29 + $0x88] sm:$0xff]  ;;  %s3104_s24 = smov 80  }
  0x24   : > { %v601_v12 = vld [vmem:[%s3282_s2 + $0x8] sm:$0x1f]  ;;  %v2874_v25 = vpack.c.bf16 %v617_v24, %v616_v23  ;;  %v2877_v28 = vpack.c.bf16 %v619_v27, %v618_v26  ;;  %v620_v29 = vld [vmem:[%s3780_s29 + $0x90] sm:$0xff]  ;;  %v621_v30 = vld [vmem:[%s3780_s29 + $0x98] sm:$0xff]  ;;  %s3105_s20 = smov 112  }
  0x25   : > { %2857 = vmatpush1.bf16.msra.mxu0 %v2856_v6  ;;  %2542 = vmatprep.mubr.msk.f32.mxu0 %vm627_vm0, %v601_v12  ;;  %v2880_v31 = vpack.c.bf16 %v621_v30, %v620_v29  ;;  %v622_v32 = vld [vmem:[%s3780_s29 + $0xa0] sm:$0xff]  ;;  %v623_v33 = vld [vmem:[%s3780_s29 + $0xa8] sm:$0xff]  ;;  %v624_v35 = vld [vmem:[%s3780_s29 + $0xb0] sm:$0xff] }
  0x26   : > { %2858 = vmatprep.subr.bf16.mxu0 %v3099_v3  ;;  %v2883_v34 = vpack.c.bf16 %v623_v33, %v622_v32  ;;  %v625_v36 = vld [vmem:[%s3780_s29 + $0xb8] sm:$0xff]  ;;  %v600_v38 = vld [vmem:[%s3282_s2] sm:$0x1f]  ;;  %s2616_s2 = sshll.u32 %s3229_s1, 4  ;;  %s3107_s1 = smov [#allocation2]  }
  0x27   : > { %v2886_v37 = vpack.c.bf16 %v625_v36, %v624_v35  ;;  %v626_v39 = vld [vmem:[%s3782_s26] sm:$0x1f]  ;;  %s3784_s26 = smov %s3783_s0 }
  0x28   : > { %v2543_v60 = vld [vmem:[%s3783_s0] ss:$0 sm:$0xff]  ;;  %s593_s0 = sand.u32 1, %s3089_s30  }
  0x29   : > { %2860 = vmatpush1.bf16.msra.mxu0 %v2859_v9  ;;  %v2544_v62 = vld [vmem:[%s3785_s4] ss:$0 sm:$0xff] }
  0x2a   : > { %2861 = vmatprep.subr.bf16.mxu0 %v3099_v3  ;;  %v2545_v1 = vld [vmem:[%s3741_s6] ss:$0 sm:$0xff] }
  0x2b   : > { %v817_v18 = vld [vmem:[%s3742_s7] sm:$0xff] }
  0x2d   : > { %2863 = vmatpush1.bf16.msra.mxu0 %v2862_v13 }
  0x2e   : > { %2864 = vmatprep.subr.bf16.mxu0 %v3099_v3 }
  0x31   : > { %2866 = vmatpush1.bf16.msra.mxu0 %v2865_v16 }
  0x32   : > { %2867 = vmatprep.subr.bf16.mxu0 %v3099_v3 }
  0x35   : > { %2869 = vmatpush1.bf16.msra.mxu0 %v2868_v19  ;;  %v818_v19 = vld [vmem:[%s3742_s7 + $0x8] sm:$0xff] }
  0x36   : > { %2870 = vmatprep.subr.bf16.mxu0 %v3099_v3  ;;  %v2895_v21 = vpack.c.bf16 %v818_v19, %v817_v18  ;;  %v1436_v18 = vld [vmem:[%s3748_s13 + $0x20] sm:$0xff]  ;;  %v1437_v19 = vld [vmem:[%s3748_s13 + $0x28] sm:$0xff] }
  0x39   : > { %2872 = vmatpush1.bf16.msra.mxu0 %v2871_v22 }
  0x3a   : > { %2873 = vmatprep.subr.bf16.mxu0 %v3099_v3 }
  0x3d   : > { %2875 = vmatpush1.bf16.msra.mxu0 %v2874_v25 }
  0x3e   : > { %2876 = vmatprep.subr.bf16.mxu0 %v3099_v3 }
  0x41   : > { %2878 = vmatpush1.bf16.msra.mxu0 %v2877_v28 }
  0x42   : > { %2879 = vmatprep.subr.bf16.mxu0 %v3099_v3 }
  0x45   : > { %2881 = vmatpush1.bf16.msra.mxu0 %v2880_v31 }
  0x46   : > { %2882 = vmatprep.subr.bf16.mxu0 %v3099_v3 }
  0x49   : > { %2884 = vmatpush1.bf16.msra.mxu0 %v2883_v34 }
  0x4a   : > { %2885 = vmatprep.subr.bf16.mxu0 %v3099_v3 }
  0x4d   : > { %2887 = vmatpush1.bf16.msra.mxu0 %v2886_v37 }
  0x4e   : > { %2918 = vmatprep.subr.bf16.mxu0 %v3099_v3 }
  0x50   : > { %696 = vmatmul.mubr.f32.vlgmr.msra.gmra.mrb[0].mxu0 %v600_v38 }
  0x51   : > { %2774 = vmatprep.mubr.msk.f32.mxu0 %vm3100_vm2, %v3101_v54 }
 0x123   : > { %v697_v40 = vpop.f32.mrb[0].mxu0 }
 0x124   : > { %v3355_v41 = vadd.f32 %v697_v40, %v626_v39  ;;  %v699_v42 = vpop.f32.mrb[1].mxu0  ;;  %v819_v40 = vld [vmem:[%s3742_s7 + $0x10] sm:$0xff] }
 0x125   : > { %v820_v42 = vld [vmem:[%s3742_s7 + $0x18] sm:$0xff] }
 0x126   : > { %v704_v43 = vsel %vm703_vm1, %v3355_v41, 0.0 }
 0x127   : > { %705 = vadd.xlane.f32.xlu0 %v704_v43 }
 0x1b4   : > { %v706_v44 = vpop.xlane.xlu0 %705 }
 0x1b5   : > { %v708_v45 = vmul.f32 0.03125, %v706_v44  ;;  %v2898_v44 = vpack.c.bf16 %v820_v42, %v819_v40 }
 0x1b7   : > { %v709_v46 = vsub.f32 %v3355_v41, %v708_v45 }
 0x1b9   : > { %v710_v47 = vmul.f32 %v709_v46, %v709_v46 }
 0x1bb   : > { %v711_v48 = vsel %vm703_vm1, %v710_v47, 0.0 }
 0x1bc   : > { %712 = vadd.xlane.f32.xlu0 %v711_v48  ;;  %v2552_v48 = vld [vmem:[%s3743_s8] ss:$0 sm:$0xff] }
 0x249   : > { %v713_v56 = vpop.xlane.xlu0 %712 }
 0x24a   : > { %v714_v57 = vmul.f32 0.03125, %v713_v56 }
 0x24c   : > { %v715_v58 = vadd.f32 1e-12, %v714_v57 }
 0x24e   : > { %3001 = vrsqrt.f32 %v715_v58 }
 0x258   : > { %v3002_v59 = vpop.eup %3001 }
 0x259   : > { %v717_v61 = vmul.f32 %v3002_v59, %v709_v46 }
 0x25b   : > { %v724_v63 = vmul.f32 %v2543_v60, %v717_v61  ;;  %v1343_v61 = vld [vmem:[%s3746_s11] sm:$0xff] }
 0x25d   : > { %v731_v0 = vadd.f32 %v2544_v62, %v724_v63  ;;  %v1345_v63 = vld [vmem:[%s3746_s11 + $0x10] sm:$0xff] }
 0x25f   : > { %2700 = vmatmul.mubr.msk.f32.vlgmr.msra.gmra.mrb[0].mxu1 %vm743_vm3, %v731_v0  ;;  %v1346_v0 = vld [vmem:[%s3746_s11 + $0x18] sm:$0xff] }
 0x260   : > { %2704 = vmatprep.mubr.msk.f32.mxu1 %vm3100_vm2, %v3101_v54 }
 0x332   : > { %v813_v2 = vpop.f32.mrb[0].mxu1 }
 0x333   : > { %v814_v4 = vadd.f32 %v2545_v1, %v813_v2  ;;  %v2701_v5 = vpop.f32.mrb[1].mxu1  ;;  %v2904_v1 = vpack.c.bf16 %v1346_v0, %v1345_v63 }
 0x335   : > { %823 = vrot.lane.b32.xlu1 %v814_v4, %s3102_s21 }
 0x3a7   : > { %v824_v6 = vpop.permute.xlu1 %823 }
 0x3a8   : > { %2703 = vmatpush3.xpose.msk.msra.mxu1 %vm825_vm4, %v824_v6 }
 0x3a9   : > { %2707 = vmatprep.subr.mxu1 %v3101_v54 }
 0x3ab   : > { %2705 = vmatmul.mubr.msk.f32.vlgmr.msra.gmra.mrb[2].mxu1 %vm825_vm4, %v814_v4 }
 0x3ac   : > { %2709 = vmatprep.mubr.msk.f32.mxu1 %vm3100_vm2, %v3101_v54 }
 0x47e   : > { %v896_v7 = vpop.f32.mrb[2].mxu1 }
 0x47f   : > { %v900_v8 = vmul.f32 0.25, %v896_v7  ;;  %v2706_v9 = vpop.f32.mrb[3].mxu1  ;;  %v2558_v7 = vld [vmem:[%s3744_s9] ss:$0 sm:$0xff] }
 0x480   : > { %v2559_v9 = vld [vmem:[%s3745_s10] ss:$0 sm:$0xff] }
 0x481   : > { %v902_v10 = vsel %vm901_vm5, %v900_v8, -inf }
 0x482   : > { %903 = vmax.xlane.f32.xlu1 %v902_v10 }
 0x50f   : > { %v904_v11 = vpop.xlane.xlu1 %903 }
 0x510   : > { %v905_v12 = vsub.f32 %v900_v8, %v904_v11 }
 0x512   : > { %v906_v13 = vmul.f32 1.442695, %v905_v12  ;;  %v1432_v12 = vld [vmem:[%s3748_s13] sm:$0xff] }
 0x514   : > { %3003 = vpow2.f32 %v906_v13  ;;  %v1433_v13 = vld [vmem:[%s3748_s13 + $0x8] sm:$0xff] }
 0x51e   : > { %v3004_v14 = vpop.eup %3003 }
 0x51f   : > { %v908_v15 = vsel %vm901_vm5, %v3004_v14, 0.0 }
 0x520   : > { %909 = vadd.xlane.f32.xlu0 %v908_v15  ;;  %v1434_v15 = vld [vmem:[%s3748_s13 + $0x10] sm:$0xff] }
 0x536   : > { %913 = vrot.lane.b32.xlu0 %v814_v4, %s3765_s23  ;;  %s3788_s23 = sld [smem:[#allocation16_spill]] }
 0x53a   : > { %1074 = vrot.lane.b32.xlu0 %v814_v4, %s3104_s24 }
 0x53e   : > { %1072 = vrot.lane.b32.xlu0 %v814_v4, %s3105_s20 }
 0x5ad   : > { %v910_v16 = vpop.xlane.xlu0 %909 }
 0x5ae   : > { %3005 = vrcp.f32 %v910_v16  ;;  %v1435_v16 = vld [vmem:[%s3748_s13 + $0x18] sm:$0xff] }
 0x5b1   : > { %v914_v17 = vpop.permute.xlu0 %913 }
 0x5b2   : > { %2708 = vmatpush3.msk.msra.mxu1 %vm919_vm6, %v914_v17  ;;  %v2910_v17 = vpack.c.bf16 %v1435_v16, %v1434_v15 }
 0x5b3   : > { %2894 = vmatprep.subr.bf16.mxu1 %v3099_v3 }
 0x5b5   : > { %v1075_v23 = vpop.permute.xlu0 %1074 }
 0x5b8   : > { %v3006_v20 = vpop.eup %3005 }
 0x5b9   : > { %v912_v22 = vmul.f32 %v3006_v20, %v3004_v14  ;;  %v1073_v26 = vpop.permute.xlu0 %1072  ;;  %v2907_v14 = vpack.c.bf16 %v1433_v13, %v1432_v12  ;;  %v2913_v20 = vpack.c.bf16 %v1437_v19, %v1436_v18  ;;  %v2576_v12 = vld [vmem:[%s3742_s7 + $0x28] sm:$0xff] }
 0x5bb   : > { %2710 = vmatmul.mubr.msk.f32.vlgmr.msra.gmra.mrb[4].mxu1 %vm915_vm7, %v912_v22  ;;  %v1439_v22 = vld [vmem:[%s3748_s13 + $0x38] sm:$0xff] }
 0x5bc   : > { %2896 = vmatpush3.bf16.msra.mxu1 %v2895_v21  ;;  %2716 = vmatprep.mubr.msk.f32.mxu1 %vm3100_vm2, %v3101_v54  ;;  %v1438_v21 = vld [vmem:[%s3748_s13 + $0x30] sm:$0xff] }
 0x5bd   : > { %2719 = vmatprep.subr.mxu1 %v3101_v54 }
 0x68e   : > { %v988_v24 = vpop.f32.mrb[4].mxu1 }
 0x68f   : > { %v2711_v25 = vpop.f32.mrb[5].mxu1  ;;  %2717 = vmatmul.mubr.msk.f32.vlgmr.msra.gmra.mrb[6].mxu1 %vm825_vm4, %v988_v24  ;;  %v2560_v24 = vld [vmem:[%s3747_s12] ss:$0 sm:$0xff] }
 0x690   : > { %2720 = vmatpush3.xpose.msk.msra.mxu1 %vm825_vm4, %v1075_v23  ;;  %2721 = vmatprep.mubr.msk.f32.mxu1 %vm3100_vm2, %v3101_v54  ;;  %v2916_v23 = vpack.c.bf16 %v1439_v22, %v1438_v21 }
 0x691   : > { %2724 = vmatprep.subr.mxu1 %v3101_v54 }
 0x693   : > { %2722 = vmatmul.mubr.msk.f32.vlgmr.msra.gmra.mrb[8].mxu1 %vm825_vm4, %v1073_v26 }
 0x694   : > { %2726 = vmatprep.mubr.msk.f32.mxu1 %vm3100_vm2, %v3101_v54 }
 0x762   : > { %v1061_v27 = vpop.f32.mrb[6].mxu1 }
 0x763   : > { %v2718_v28 = vpop.f32.mrb[7].mxu1  ;;  %v1071_v49 = vadd.f32 %v2552_v48, %v1061_v27  ;;  %v2570_v48 = vld [vmem:[%s3740_s5 + $0x30] sm:$0xff] }
 0x766   : > { %v1146_v29 = vpop.f32.mrb[8].mxu1 }
 0x767   : > { %v1150_v30 = vmul.f32 0.25, %v1146_v29  ;;  %v2723_v31 = vpop.f32.mrb[9].mxu1 }
 0x769   : > { %v1151_v32 = vsel %vm901_vm5, %v1150_v30, -inf }
 0x76a   : > { %1152 = vmax.xlane.f32.xlu1 %v1151_v32 }
 0x77b   : > { %1162 = vrot.lane.b32.xlu1 %v814_v4, %s3764_s27  ;;  %s3692_s27 = scalar_lea.hbm %s3788_s23, %s2616_s2 }
 0x7f7   : > { %v1153_v33 = vpop.xlane.xlu1 %1152 }
 0x7f8   : > { %v1154_v34 = vsub.f32 %v1150_v30, %v1153_v33 }
 0x7fa   : > { %v1155_v35 = vmul.f32 1.442695, %v1154_v34  ;;  %v2563_v34 = vld [vmem:[%s3749_s14] ss:$0 sm:$0xff] }
 0x7fb   : > { %v1163_v36 = vpop.permute.xlu1 %1162 }
 0x7fc   : > { %3007 = vpow2.f32 %v1155_v35  ;;  %2725 = vmatpush3.msk.msra.mxu1 %vm919_vm6, %v1163_v36 }
 0x7fd   : > { %2897 = vmatprep.subr.bf16.mxu1 %v3099_v3 }
 0x806   : > { %v3008_v37 = vpop.eup %3007 }
 0x807   : > { %v1157_v38 = vsel %vm901_vm5, %v3008_v37, 0.0 }
 0x808   : > { %1158 = vadd.xlane.f32.xlu0 %v1157_v38 }
 0x895   : > { %v1159_v39 = vpop.xlane.xlu0 %1158 }
 0x896   : > { %3009 = vrcp.f32 %v1159_v39 }
 0x8a0   : > { %v3010_v43 = vpop.eup %3009 }
 0x8a1   : > { %v1161_v45 = vmul.f32 %v3010_v43, %v3008_v37 }
 0x8a3   : > { %2727 = vmatmul.mubr.msk.f32.vlgmr.msra.gmra.mrb[10].mxu1 %vm915_vm7, %v1161_v45  ;;  %v2568_v45 = vld [vmem:[%s3740_s5 + $0x20] sm:$0xff] }
 0x8a4   : > { %2899 = vmatpush3.bf16.msra.mxu1 %v2898_v44  ;;  %2733 = vmatprep.mubr.msk.f32.mxu1 %vm3100_vm2, %v3101_v54 }
 0x8a5   : > { %2900 = vmatprep.subr.bf16.mxu1 %v3099_v3 }
 0x976   : > { %v1235_v46 = vpop.f32.mrb[10].mxu1 }
 0x977   : > { %v2728_v47 = vpop.f32.mrb[11].mxu1  ;;  %2734 = vmatmul.mubr.msk.f32.vlgmr.msra.gmra.mrb[12].mxu1 %vm825_vm4, %v1235_v46  ;;  %v2569_v46 = vld [vmem:[%s3740_s5 + $0x28] sm:$0xff] }
 0x978   : > { %2744 = vmatprep.mubr.msk.f32.mxu1 %vm3100_vm2, %v3101_v54  ;;  %v2919_v47 = vpack.c.bf16 %v2569_v46, %v2568_v45 }
 0x97a   : > { %2920 = vmatpush3.bf16.msra.mxu0 %v2919_v47 }
 0x97b   : > { %2921 = vmatprep.subr.bf16.mxu0 %v3099_v3 }
 0xa4a   : > { %v1308_v50 = vpop.f32.mrb[12].mxu1 }
 0xa4b   : > { %v1312_v51 = vadd.f32 %v1308_v50, %v1071_v49  ;;  %v2735_v52 = vpop.f32.mrb[13].mxu1  ;;  %v2571_v49 = vld [vmem:[%s3740_s5 + $0x38] sm:$0xff] }
 0xa4c   : > { %v2922_v50 = vpack.c.bf16 %v2571_v49, %v2570_v48 }
 0xa4d   : > { %v3444_v53 = vadd.f32 %v1312_v51, %v3355_v41  ;;  %v1344_v41 = vld [vmem:[%s3746_s11 + $0x8] sm:$0xff] }
 0xa4e   : > { %v2901_v62 = vpack.c.bf16 %v1344_v41, %v1343_v61  ;;  %2923 = vmatpush3.bf16.msra.mxu0 %v2922_v50  ;;  %v2573_v61 = vld [vmem:[%s3741_s6 + $0x1] ss:$0 sm:$0xff] }
 0xa4f   : > { %v1316_v55 = vsel %vm703_vm1, %v3444_v53, 0.0  ;;  %2777 = vmatprep.subr.mxu0 %v3101_v54 }
 0xa50   : > { %1317 = vadd.xlane.f32.xlu1 %v1316_v55  ;;  %2902 = vmatpush3.bf16.msra.mxu1 %v2901_v62 }
 0xa51   : > { %2903 = vmatprep.subr.bf16.mxu1 %v3099_v3 }
 0xa54   : > { %2905 = vmatpush3.bf16.msra.mxu1 %v2904_v1 }
 0xa55   : > { %2906 = vmatprep.subr.bf16.mxu1 %v3099_v3 }
 0xadd   : > { %v1318_v56 = vpop.xlane.xlu1 %1317 }
 0xade   : > { %v1319_v57 = vmul.f32 0.03125, %v1318_v56  ;;  %v2566_v56 = vld [vmem:[%s3784_s26 + $0x1] ss:$0 sm:$0xff] }
 0xae0   : > { %v1320_v58 = vsub.f32 %v3444_v53, %v1319_v57 }
 0xae2   : > { %v1321_v59 = vmul.f32 %v1320_v58, %v1320_v58 }
 0xae4   : > { %v1322_v60 = vsel %vm703_vm1, %v1321_v59, 0.0 }
 0xae5   : > { %1323 = vadd.xlane.f32.xlu0 %v1322_v60 }
 0xb72   : > { %v1324_v2 = vpop.xlane.xlu0 %1323 }
 0xb73   : > { %v1325_v4 = vmul.f32 0.03125, %v1324_v2 }
 0xb75   : > { %v1326_v5 = vadd.f32 1e-12, %v1325_v4 }
 0xb77   : > { %3011 = vrsqrt.f32 %v1326_v5 }
 0xb81   : > { %v3012_v6 = vpop.eup %3011 }
 0xb82   : > { %v1328_v8 = vmul.f32 %v3012_v6, %v1320_v58  ;;  %v2567_v58 = vld [vmem:[%s3785_s4 + $0x1] ss:$0 sm:$0xff] }
 0xb84   : > { %v1335_v10 = vmul.f32 %v2558_v7, %v1328_v8 }
 0xb86   : > { %v1342_v11 = vadd.f32 %v2559_v9, %v1335_v10 }
 0xb88   : > { %2745 = vmatmul.mubr.msk.f32.vlgmr.msra.gmra.mrb[14].mxu1 %vm743_vm3, %v1342_v11  ;;  %v2575_v11 = vld [vmem:[%s3742_s7 + $0x20] sm:$0xff] }
 0xb89   : > { %2763 = vmatprep.mubr.msk.f32.mxu1 %vm3100_vm2, %v3101_v54  ;;  %2908 = vmatpush3.bf16.msra.mxu1 %v2907_v14  ;;  %v2925_v13 = vpack.c.bf16 %v2576_v12, %v2575_v11  ;;  %v2606_v12 = vld [vmem:[%s3748_s13 + $0x60] sm:$0xff] }
 0xb8a   : > { %2909 = vmatprep.subr.bf16.mxu1 %v3099_v3 }
 0xb8d   : > { %2911 = vmatpush3.bf16.msra.mxu1 %v2910_v17 }
 0xb8e   : > { %2912 = vmatprep.subr.bf16.mxu1 %v3099_v3 }
 0xb91   : > { %2914 = vmatpush3.bf16.msra.mxu1 %v2913_v20 }
 0xb92   : > { %2915 = vmatprep.subr.bf16.mxu1 %v3099_v3 }
 0xb95   : > { %2917 = vmatpush3.bf16.msra.mxu1 %v2916_v23 }
 0xb96   : > { %2782 = vmatprep.subr.mxu1 %v3101_v54 }
 0xc5b   : > { %v1423_v25 = vpop.f32.mrb[14].mxu1 }
 0xc5c   : > { %v1424_v26 = vadd.f32 %v2560_v24, %v1423_v25  ;;  %v2746_v27 = vpop.f32.mrb[15].mxu1 }
 0xc5e   : > { %v1428_v28 = vmul.f32 0.70710677, %v1424_v26  ;;  %v1427_v30 = vmul.f32 0.5, %v1424_v26 }
 0xc60   : > { %3013 = verf.f32 %v1428_v28 }
 0xc6a   : > { %v3014_v29 = vpop.eup %3013 }
 0xc6b   : > { %v1430_v31 = vadd.f32 1.0, %v3014_v29 }
 0xc6d   : > { %v1431_v32 = vmul.f32 %v1430_v31, %v1427_v30 }
 0xc6f   : > { %2764 = vmatmul.mubr.msk.f32.vlgmr.msra.gmra.mrb[16].mxu1 %vm627_vm0, %v1431_v32  ;;  %v2577_v32 = vld [vmem:[%s3742_s7 + $0x30] sm:$0xff] }
 0xc70   : > { %2784 = vmatprep.mubr.msk.f32.mxu1 %vm3100_vm2, %v3101_v54 }
 0xd42   : > { %v1509_v33 = vpop.f32.mrb[16].mxu1 }
 0xd43   : > { %v1513_v35 = vadd.f32 %v1509_v33, %v3444_v53  ;;  %v2765_v36 = vpop.f32.mrb[17].mxu1  ;;  %v2578_v33 = vld [vmem:[%s3742_s7 + $0x38] sm:$0xff] }
 0xd45   : > { %v3511_v37 = vadd.f32 %v2563_v34, %v1513_v35  ;;  %v2928_v34 = vpack.c.bf16 %v2578_v33, %v2577_v32 }
 0xd47   : > { %v1526_v38 = vsel %vm703_vm1, %v3511_v37, 0.0 }
 0xd48   : > { %1527 = vadd.xlane.f32.xlu0 %v1526_v38 }
 0xdd5   : > { %v1528_v39 = vpop.xlane.xlu0 %1527 }
 0xdd6   : > { %v1529_v40 = vmul.f32 0.03125, %v1528_v39 }
 0xdd8   : > { %v1530_v42 = vsub.f32 %v3511_v37, %v1529_v40 }
 0xdda   : > { %v1531_v43 = vmul.f32 %v1530_v42, %v1530_v42 }
 0xddc   : > { %v1532_v44 = vsel %vm703_vm1, %v1531_v43, 0.0 }
 0xddd   : > { %1533 = vadd.xlane.f32.xlu0 %v1532_v44  ;;  %v2585_v44 = vld [vmem:[%s3743_s8 + $0x1] ss:$0 sm:$0xff] }
 0xe6a   : > { %v1534_v51 = vpop.xlane.xlu0 %1533 }
 0xe6b   : > { %v1535_v52 = vmul.f32 0.03125, %v1534_v51 }
 0xe6d   : > { %v1536_v53 = vadd.f32 1e-12, %v1535_v52 }
 0xe6f   : > { %3015 = vrsqrt.f32 %v1536_v53 }
 0xe79   : > { %v3016_v55 = vpop.eup %3015 }
 0xe7a   : > { %v1538_v57 = vmul.f32 %v3016_v55, %v1530_v42 }
 0xe7c   : > { %v1545_v59 = vmul.f32 %v2566_v56, %v1538_v57  ;;  %v2595_v57 = vld [vmem:[%s3746_s11 + $0x20] sm:$0xff] }
 0xe7e   : > { %v1552_v60 = vadd.f32 %v2567_v58, %v1545_v59  ;;  %v2597_v59 = vld [vmem:[%s3746_s11 + $0x30] sm:$0xff] }
 0xe80   : > { %2775 = vmatmul.mubr.msk.f32.vlgmr.msra.gmra.mrb[2].mxu0 %vm743_vm3, %v1552_v60  ;;  %v2598_v60 = vld [vmem:[%s3746_s11 + $0x38] sm:$0xff] }
 0xe81   : > { %2779 = vmatprep.mubr.msk.f32.mxu0 %vm3100_vm2, %v3101_v54 }
 0xf53   : > { %v1635_v41 = vpop.f32.mrb[2].mxu0 }
 0xf54   : > { %v1636_v62 = vadd.f32 %v2573_v61, %v1635_v41  ;;  %v2776_v63 = vpop.f32.mrb[3].mxu0  ;;  %v2934_v61 = vpack.c.bf16 %v2598_v60, %v2597_v59 }
 0xf56   : > { %1647 = vrot.lane.b32.xlu0 %v1636_v62, %s3102_s21  ;;  %s3786_s21 = smov 64  }
 0xf5a   : > { %1894 = vrot.lane.b32.xlu0 %v1636_v62, %s3104_s24 }
 0xf5e   : > { %1892 = vrot.lane.b32.xlu0 %v1636_v62, %s3105_s20  ;;  %s3039_s20 = sshll.u32 %s3107_s1, 4  ;;  %s3040_s20 = int_to_ptr.vmem [resolvable:$false] %s3039_s20 }
 0xf5f   : > { %s3041_s4 = scalar_lea.vmem %s3040_s20, 32 }
 0xfc8   : > { %v1648_v0 = vpop.permute.xlu0 %1647 }
 0xfc9   : > { %2778 = vmatpush3.xpose.msk.msra.mxu0 %vm825_vm4, %v1648_v0 }
 0xfca   : > { %2924 = vmatprep.subr.bf16.mxu0 %v3099_v3 }
 0xfcc   : > { %2780 = vmatmul.mubr.msk.f32.vlgmr.msra.gmra.mrb[4].mxu0 %vm825_vm4, %v1636_v62  ;;  %v1895_v17 = vpop.permute.xlu0 %1894 }
 0xfcd   : > { %2791 = vmatprep.mubr.msk.f32.mxu0 %vm3100_vm2, %v3101_v54  ;;  %2926 = vmatpush3.bf16.msra.mxu0 %v2925_v13  ;;  %v2607_v13 = vld [vmem:[%s3748_s13 + $0x68] sm:$0xff] }
 0xfce   : > { %2799 = vmatprep.subr.mxu0 %v3101_v54 }
 0xfd0   : > { %v1893_v19 = vpop.permute.xlu0 %1892 }
0x109f   : > { %v1719_v1 = vpop.f32.mrb[4].mxu0 }
0x10a0   : > { %v1723_v2 = vmul.f32 0.25, %v1719_v1  ;;  %v2781_v4 = vpop.f32.mrb[5].mxu0  ;;  %v2593_v1 = vld [vmem:[%s3744_s9 + $0x1] ss:$0 sm:$0xff] }
0x10a1   : > { %v2594_v4 = vld [vmem:[%s3745_s10 + $0x1] ss:$0 sm:$0xff] }
0x10a2   : > { %v1724_v5 = vsel %vm901_vm5, %v1723_v2, -inf }
0x10a3   : > { %1725 = vmax.xlane.f32.xlu1 %v1724_v5 }
0x1130   : > { %v1726_v6 = vpop.xlane.xlu1 %1725 }
0x1131   : > { %v1727_v7 = vsub.f32 %v1723_v2, %v1726_v6 }
0x1133   : > { %v1728_v8 = vmul.f32 1.442695, %v1727_v7  ;;  %v2602_v7 = vld [vmem:[%s3748_s13 + $0x40] sm:$0xff] }
0x1135   : > { %3017 = vpow2.f32 %v1728_v8  ;;  %v2603_v8 = vld [vmem:[%s3748_s13 + $0x48] sm:$0xff] }
0x113f   : > { %v3018_v9 = vpop.eup %3017 }
0x1140   : > { %v1730_v10 = vsel %vm901_vm5, %v3018_v9, 0.0 }
0x1141   : > { %1731 = vadd.xlane.f32.xlu1 %v1730_v10  ;;  %v2604_v10 = vld [vmem:[%s3748_s13 + $0x50] sm:$0xff] }
0x1152   : > { %1735 = vrot.lane.b32.xlu1 %v1636_v62, %s3786_s21  ;;  %s2469_s21 = scalar_lea.sflag [#allocation3], %s593_s0 }
0x11ce   : > { %v1732_v14 = vpop.xlane.xlu1 %1731 }
0x11cf   : > { %3019 = vrcp.f32 %v1732_v14  ;;  %v2943_v14 = vpack.c.bf16 %v2607_v13, %v2606_v12 }
0x11d2   : > { %v1736_v15 = vpop.permute.xlu1 %1735 }
0x11d3   : > { %2783 = vmatpush3.msk.msra.mxu1 %vm919_vm6, %v1736_v15  ;;  %v2608_v15 = vld [vmem:[%s3748_s13 + $0x70] sm:$0xff] }
0x11d4   : > { %2794 = vmatprep.subr.mxu1 %v3101_v54 }
0x11d9   : > { %v3020_v16 = vpop.eup %3019 }
0x11da   : > { %v1734_v18 = vmul.f32 %v3020_v16, %v3018_v9  ;;  %v2937_v9 = vpack.c.bf16 %v2603_v8, %v2602_v7  ;;  %v2609_v16 = vld [vmem:[%s3748_s13 + $0x78] sm:$0xff] }
0x11dc   : > { %2785 = vmatmul.mubr.msk.f32.vlgmr.msra.gmra.mrb[18].mxu1 %vm915_vm7, %v1734_v18  ;;  %v2600_v18 = vld [vmem:[%s3747_s12 + $0x1] ss:$0 sm:$0xff] }
0x11dd   : > { %2795 = vmatpush3.xpose.msk.msra.mxu1 %vm825_vm4, %v1895_v17  ;;  %2796 = vmatprep.mubr.msk.f32.mxu1 %vm3100_vm2, %v3101_v54  ;;  %v2946_v17 = vpack.c.bf16 %v2609_v16, %v2608_v15 }
0x11de   : > { %2927 = vmatprep.subr.bf16.mxu1 %v3099_v3 }
0x11e0   : > { %2797 = vmatmul.mubr.msk.f32.vlgmr.msra.gmra.mrb[20].mxu1 %vm825_vm4, %v1893_v19 }
0x11e1   : > { %2808 = vmatprep.mubr.msk.f32.mxu1 %vm3100_vm2, %v3101_v54  ;;  %2929 = vmatpush3.bf16.msra.mxu1 %v2928_v34 }
0x11e2   : > { %2936 = vmatprep.subr.bf16.mxu1 %v3099_v3 }
0x12af   : > { %v1808_v20 = vpop.f32.mrb[18].mxu1 }
0x12b0   : > { %v2786_v21 = vpop.f32.mrb[19].mxu1  ;;  %2792 = vmatmul.mubr.msk.f32.vlgmr.msra.gmra.mrb[6].mxu0 %vm825_vm4, %v1808_v20 }
0x12b1   : > { %2801 = vmatprep.mubr.msk.f32.mxu0 %vm3100_vm2, %v3101_v54 }
0x12b3   : > { %v1966_v22 = vpop.f32.mrb[20].mxu1 }
0x12b4   : > { %v1970_v23 = vmul.f32 0.25, %v1966_v22  ;;  %v2798_v24 = vpop.f32.mrb[21].mxu1 }
0x12b6   : > { %v1971_v25 = vsel %vm901_vm5, %v1970_v23, -inf }
0x12b7   : > { %1972 = vmax.xlane.f32.xlu0 %v1971_v25 }
0x12cd   : > { %1982 = vrot.lane.b32.xlu0 %v1636_v62, %s3787_s25  ;;  %s594_s25 = scalar_lea.vmem [#allocation2], %s593_s0 }
0x12ce   : > { %s2481_s19 = sshll.u32 %s594_s25, 4  ;;  %s3694_s19 = int_to_ptr.vmem [resolvable:$true] %s2481_s19 }
0x12cf   : > { %s3035_s24 = scalar_lea.vmem %s3694_s19, 16  ;;  %p3042_p0 = scmp.lt.s32.totalorder %s3694_s19, %s3040_s20 }
0x12d0   : > { %p3036_p11 = scmp.ne.s32.totalorder %s3694_s19, %s3035_s24  ;;  %p3043_p1 = scmp.lt.s32.totalorder %s3041_s4, %s3035_s24 }
0x12d2   : > { %p3037_p12 = pnand %p3036_p11, %p3246_p5  ;;  %p3044_p2 = por %p3043_p1, %p3042_p0 }
0x12d4   : > { %p3038_p13 = pneg %p3037_p12 }
0x12d6   : > { %p3045_p3 = pnand %p3044_p2, %p3038_p13 }
0x1344   : > { %v1973_v26 = vpop.xlane.xlu0 %1972 }
0x1345   : > { %v1974_v27 = vsub.f32 %v1970_v23, %v1973_v26 }
0x1347   : > { %v1975_v28 = vmul.f32 1.442695, %v1974_v27 }
0x1348   : > { %v1983_v29 = vpop.permute.xlu0 %1982 }
0x1349   : > { %3021 = vpow2.f32 %v1975_v28  ;;  %2800 = vmatpush3.msk.msra.mxu0 %vm919_vm6, %v1983_v29  ;;  %v2612_v28 = vld [vmem:[%s3749_s14 + $0x1] ss:$0 sm:$0xff] }
0x134a   : > { %2930 = vmatprep.subr.bf16.mxu0 %v3099_v3 }
0x1353   : > { %v3022_v30 = vpop.eup %3021 }
0x1354   : > { %v1977_v31 = vsel %vm901_vm5, %v3022_v30, 0.0 }
0x1355   : > { %1978 = vadd.xlane.f32.xlu1 %v1977_v31 }
0x1383   : > { %v1881_v35 = vpop.f32.mrb[6].mxu0 }
0x1384   : > { %v2793_v36 = vpop.f32.mrb[7].mxu0  ;;  %v1891_v45 = vadd.f32 %v2585_v44, %v1881_v35  ;;  %v2380_v44 = vld [vmem:[%s3752_s17 + $0x18] sm:$0xff] }
0x13e2   : > { %v1979_v38 = vpop.xlane.xlu1 %1978 }
0x13e3   : > { %3023 = vrcp.f32 %v1979_v38 }
0x13ed   : > { %v3024_v39 = vpop.eup %3023 }
0x13ee   : > { %v1981_v40 = vmul.f32 %v3024_v39, %v3022_v30  ;;  %v2377_v39 = vld [vmem:[%s3752_s17] sm:$0xff] }
0x13f0   : > { %2802 = vmatmul.mubr.msk.f32.vlgmr.msra.gmra.mrb[8].mxu0 %vm915_vm7, %v1981_v40  ;;  %v2378_v40 = vld [vmem:[%s3752_s17 + $0x8] sm:$0xff] }
0x13f1   : > { %2819 = vmatprep.mubr.msk.f32.mxu0 %vm3100_vm2, %v3101_v54 }
0x14c3   : > { %v2055_v42 = vpop.f32.mrb[8].mxu0 }
0x14c4   : > { %v2803_v43 = vpop.f32.mrb[9].mxu0  ;;  %2809 = vmatmul.mubr.msk.f32.vlgmr.msra.gmra.mrb[22].mxu1 %vm825_vm4, %v2055_v42  ;;  %v2949_v42 = vpack.c.bf16 %v2378_v40, %v2377_v39 }
0x14c5   : > { %2838 = vmatprep.mubr.msk.f32.mxu1 %vm3100_vm2, %v3101_v54  ;;  %2938 = vmatpush3.bf16.msra.mxu1 %v2937_v9  ;;  %v2379_v43 = vld [vmem:[%s3752_s17 + $0x10] sm:$0xff] }
0x14c6   : > { %2939 = vmatprep.subr.bf16.mxu1 %v3099_v3 }
0x1597   : > { %v2128_v46 = vpop.f32.mrb[22].mxu1 }
0x1598   : > { %v2132_v47 = vadd.f32 %v2128_v46, %v1891_v45  ;;  %v2810_v48 = vpop.f32.mrb[23].mxu1  ;;  %v2952_v45 = vpack.c.bf16 %v2380_v44, %v2379_v43 }
0x159a   : > { %v3596_v49 = vadd.f32 %v2132_v47, %v3511_v37  ;;  %v2596_v37 = vld [vmem:[%s3746_s11 + $0x28] sm:$0xff] }
0x159b   : > { %v2931_v58 = vpack.c.bf16 %v2596_v37, %v2595_v57 }
0x159c   : > { %v2138_v50 = vsel %vm703_vm1, %v3596_v49, 0.0 }
0x159d   : > { %2139 = vadd.xlane.f32.xlu1 %v2138_v50  ;;  %2932 = vmatpush3.bf16.msra.mxu0 %v2931_v58  ;;  %v2613_v50 = vld [vmem:[%s3750_s15] ss:$0 sm:$0xff] }
0x159e   : > { %2933 = vmatprep.subr.bf16.mxu0 %v3099_v3 }
0x15a1   : > { %2935 = vmatpush3.bf16.msra.mxu0 %v2934_v61 }
0x15a2   : > { %2948 = vmatprep.subr.bf16.mxu0 %v3099_v3 }
0x162a   : > { %v2140_v51 = vpop.xlane.xlu1 %2139 }
0x162b   : > { %v2141_v52 = vmul.f32 0.03125, %v2140_v51  ;;  %v2614_v51 = vld [vmem:[%s3751_s16] ss:$0 sm:$0xff] }
0x162d   : > { %v2142_v53 = vsub.f32 %v3596_v49, %v2141_v52 }
0x162f   : > { %v2143_v55 = vmul.f32 %v2142_v53, %v2142_v53 }
0x1631   : > { %v2144_v56 = vsel %vm703_vm1, %v2143_v55, 0.0  ;;  %v2381_v55 = vld [vmem:[%s3753_s18] sm:$0x1] }
0x1632   : > { %2145 = vadd.xlane.f32.xlu1 %v2144_v56 }
0x16bf   : > { %v2146_v41 = vpop.xlane.xlu1 %2145 }
0x16c0   : > { %v2147_v62 = vmul.f32 0.03125, %v2146_v41 }
0x16c2   : > { %v2148_v63 = vadd.f32 1e-12, %v2147_v62 }
0x16c4   : > { %3025 = vrsqrt.f32 %v2148_v63 }
0x16ce   : > { %v3026_v0 = vpop.eup %3025 }
0x16cf   : > { %v2150_v2 = vmul.f32 %v3026_v0, %v2142_v53 }
0x16d1   : > { %v2157_v5 = vmul.f32 %v2593_v1, %v2150_v2 }
0x16d3   : > { %v2164_v6 = vadd.f32 %v2594_v4, %v2157_v5 }
0x16d5   : > { %2820 = vmatmul.mubr.msk.f32.vlgmr.msra.gmra.mrb[10].mxu0 %vm743_vm3, %v2164_v6 }
0x16d6   : > { %2849 = vmatprep.mubr.msk.f32.mxu0 %vm3100_vm2, %v3101_v54  ;;  %v2605_v54 = vld [vmem:[%s3748_s13 + $0x58] sm:$0xff]  ;;  %2950 = vmatpush3.bf16.msra.mxu0 %v2949_v42 }
0x16d7   : > { %v2940_v11 = vpack.c.bf16 %v2605_v54, %v2604_v10  ;;  %2951 = vmatprep.subr.bf16.mxu0 %v3099_v3 }
0x16d9   : > { %2941 = vmatpush3.bf16.msra.mxu1 %v2940_v11 }
0x16da   : > { %2942 = vmatprep.subr.bf16.mxu1 %v3099_v3  ;;  %2953 = vmatpush3.bf16.msra.mxu0 %v2952_v45 }
0x16dd   : > { %2944 = vmatpush3.bf16.msra.mxu1 %v2943_v14 }
0x16de   : > { %2945 = vmatprep.subr.bf16.mxu1 %v3099_v3 }
0x16e1   : > { %2947 = vmatpush3.bf16.msra.mxu1 %v2946_v17 }
0x17a8   : > { %v2247_v19 = vpop.f32.mrb[10].mxu0 }
0x17a9   : > { %v2248_v20 = vadd.f32 %v2600_v18, %v2247_v19  ;;  %v2821_v21 = vpop.f32.mrb[11].mxu0 }
0x17ab   : > { %v2252_v22 = vmul.f32 0.70710677, %v2248_v20  ;;  %v2251_v24 = vmul.f32 0.5, %v2248_v20 }
0x17ad   : > { %3027 = verf.f32 %v2252_v22 }
0x17b7   : > { %v3028_v23 = vpop.eup %3027 }
0x17b8   : > { %v2254_v25 = vadd.f32 1.0, %v3028_v23 }
0x17ba   : > { %v2255_v26 = vmul.f32 %v2254_v25, %v2251_v24 }
0x17bc   : > { %2839 = vmatmul.mubr.msk.f32.vlgmr.msra.gmra.mrb[24].mxu1 %vm627_vm0, %v2255_v26 }
0x188f   : > { %v2334_v27 = vpop.f32.mrb[24].mxu1 }
0x1890   : > { %v2338_v29 = vadd.f32 %v2334_v27, %v3596_v49  ;;  %v2840_v30 = vpop.f32.mrb[25].mxu1 }
0x1892   : > { %v2347_v31 = vadd.f32 %v2612_v28, %v2338_v29 }
0x1894   : > { %v2350_v32 = vsel %vm703_vm1, %v2347_v31, 0.0 }
0x1895   : > { %2351 = vadd.xlane.f32.xlu1 %v2350_v32 }
0x1922   : > { %v2352_v33 = vpop.xlane.xlu1 %2351 }
0x1923   : > { %v2353_v34 = vmul.f32 0.03125, %v2352_v33 }
0x1925   : > { %v2354_v35 = vsub.f32 %v2347_v31, %v2353_v34 }
0x1927   : > { %v2355_v36 = vmul.f32 %v2354_v35, %v2354_v35 }
0x1929   : > { %v2356_v38 = vsel %vm703_vm1, %v2355_v36, 0.0 }
0x192a   : > { %2357 = vadd.xlane.f32.xlu0 %v2356_v38 }
0x19b7   : > { %v2358_v46 = vpop.xlane.xlu0 %2357 }
0x19b8   : > { %v2359_v47 = vmul.f32 0.03125, %v2358_v46 }
0x19ba   : > { %v2360_v48 = vadd.f32 1e-12, %v2359_v47 }
0x19bc   : > { %3029 = vrsqrt.f32 %v2360_v48 }
0x19c6   : > { %v3030_v49 = vpop.eup %3029 }
0x19c7   : > { %v2362_v3 = vmul.f32 %v3030_v49, %v2354_v35 }
0x19c9   : > { %v2369_v52 = vmul.f32 %v2613_v50, %v2362_v3 }
0x19cb   : > { %v2376_v53 = vadd.f32 %v2614_v51, %v2369_v52 }
0x19cd   : > { %2850 = vmatmul.mubr.msk.f32.vlgmr.msra.gmra.mrb[12].mxu0 %vm743_vm3, %v2376_v53 }
0x1aa0   : > { %v2451_v56 = vpop.f32.mrb[12].mxu0 }
0x1aa1   : > { %v2452_v57 = vadd.f32 %v2451_v56, %v2381_v55  ;;  %v2851_v37 = vpop.f32.mrb[13].mxu0 }
0x1aa3   : > { %v2456_v58 = vsel %vm2455_vm8, %v2452_v57, -inf }
0x1aa4   : > { %2457 = vmax.xlane.f32.xlu1 %v2456_v58 }
0x1b31   : > { %v2458_v59 = vpop.xlane.xlu1 %2457 }
0x1b32   : > { %v2459_v60 = vsub.f32 %v2452_v57, %v2458_v59 }
0x1b34   : > { %v2460_v61 = vmul.f32 1.442695, %v2459_v60 }
0x1b36   : > { %3031 = vpow2.f32 %v2460_v61 }
0x1b40   : > { %v3032_v41 = vpop.eup %3031 }
0x1b41   : > { %v2462_v62 = vsel %vm2455_vm8, %v3032_v41, 0.0 }
0x1b42   : > { %2463 = vadd.xlane.f32.xlu1 %v2462_v62 }
0x1bcf   : > { %v2464_v63 = vpop.xlane.xlu1 %2463 }
0x1bd0   : > { %3033 = vrcp.f32 %v2464_v63 }
0x1bda   : > { %v3034_v0 = vpop.eup %3033 }
0x1bdb   : > { %v2466_v1 = vmul.f32 %v3034_v0, %v3032_v41 }
0x1bdd   : > { %2467 = vst.msk [vmem:[%s594_s25] sm:$0x1] %vm2455_vm8, %v2466_v1 }
0x1bde   : > { %3048 = shalt.err (!%p3045_p3)
}
0x1bdf   : > { %s3049_s0 = scalar_lea.hbm %s3692_s27, 16  ;;  %s3053_s28 = scalar_lea.hbm %s3788_s23, 32 }
0x1be0   : > { %p3050_p4 = scmp.ne.s32.totalorder %s3692_s27, %s3049_s0  ;;  %p3054_p9 = scmp.lt.u32.totalorder %s3692_s27, %s3788_s23 }
0x1be1   : > { %p3055_p10 = scmp.lt.u32.totalorder %s3053_s28, %s3049_s0  ;;  %p3057_p12 = scmp.lt.u32.totalorder %s3049_s0, %s3692_s27 }
0x1be2   : > { %p3051_p7 = pnand %p3050_p4, %p3246_p5 }
0x1be3   : > { %p3056_p11 = por %p3055_p10, %p3054_p9 }
0x1be4   : > { %p3052_p8 = pneg %p3051_p7 }
0x1be5   : > { %p3058_p13 = por %p3057_p12, %p3056_p11 }
0x1be7   : > { %p3059_p0 = pnand %p3058_p13, %p3052_p8 }
0x1be9   : > { %3062 = shalt.err (!%p3059_p0)
}
0x1bea   : > { %2954 = dma.vmem_to_hbm [thread:$0]  (%p3246_p5), %s3694_s19, 16, %s3692_s27, %s2469_s21  }
0x1beb PF: > { %s3789_s4 = sld [smem:[#allocation7_spill]]  ;;  %s3790_s24 = sld [smem:[#allocation5_spill]] }
0x1bf1   : > { %p2960_p1 = scmp.ge.s32.totalorder %s3789_s4, 2  ;;  %s2493_s2 = sand.u32 1, %s3790_s24  }
0x1bf2   : > { %s2494_s25 = scalar_lea.sflag [#allocation3], %s2493_s2 }
0x1bf3   : > { %p2957_p2 = pnand %p2960_p1, %p3250_p6 }
0x1bf5   : > { %3080 = dma.done.wait (!%p2957_p2), %s2494_s25, 16  }
0x1bf6   : > { %3082 = vsyncadd (!%p2957_p2), %s2494_s25, 4294967280  ;;  %s3792_s21 = sld [smem:[#allocation8_spill]]  ;;  %s3793_s28 = sld [smem:[#allocation6_spill]] }
0x1bf7   : > { %s3794_s20 = sld [smem:[#allocation9_spill]]  ;;  %s3795_s0 = smov %s3089_s30 }
0x1bfc   : > { %p29_p3 = scmp.ge.s32.totalorder %s3792_s21, 4   ;;  %s3796_s30 = smov %s3793_s28 }
0x1bfe   :  { %31 = sbr.rel (!%p29_p3) target bundleno = 10 (0xa), region = 143 }
0x1c05   :  { %2498 = vsyncpa [#allocation3], 1 }
0x1c06   :  { %2500 = vsyncpa [#allocation3 + $0x1], 1 }

</bundles_post_ra>
